<compile_context>
chip_gen: v7x
topology: tpu7x:2x2x1
jax: 0.10.0
libtpu: 0.0.40
codegen_flags: <defaults>
</compile_context>

<pallas_src>
import jax
import jax.numpy as jnp
from jax import lax
from jax.experimental import pallas as pl
from jax.experimental.pallas import tpu as pltpu

# ----------------------------- config ---------------------------------------
B = 2            # batch
C_IN = 8         # in_channels (== out_channels, residual requires it)
C_OUT = 8        # out_channels
HID = 32         # hidden_channels
T = 16           # sequence length
K = 5            # kernel_size (odd -> 'same' padding = K // 2)
N_LAYERS = 3     # n_layers (> 1)
PAD = K // 2
EPS = 1e-4       # LayerNorm eps

SEG = 128                      # lane-aligned per-batch segment (data at offset PAD)
LANES = B * SEG                # lane extent of every activation tile
ROWS = ((HID + 1 + 7) // 8) * 8  # conv matmul rows: HID + fused-mean row, sublane-padded
assert T + 2 * PAD <= SEG, "time + conv halo must fit inside one 128-lane segment"


# ----------------------------- Pallas kernel --------------------------------
def conv_relu_norm_kernel(x_ref, m_ref, w0_ref, b0_ref, wr_ref, br_ref,
                          g_ref, bt_ref, wp_ref, bp_ref, o_ref):
    x_all = x_ref[...]                       # (C_IN, LANES) f32, zero halo lanes
    m_all = m_ref[...]                       # (1, LANES)   f32, zero halo lanes

    h = x_all
    for layer in range(N_LAYERS):
        # x * x_mask: applies the module mask AND re-zeroes the halo lanes
        # that serve as the 'same' conv padding for this layer.
        hm = h * m_all                                     # (cin, LANES) f32

        # K-tap 'same' conv as K accumulating MXU matmuls over lane-rotated
        # activations (XLU rolls, bf16 MXU operands, f32 accumulation).
        acc = jnp.zeros((ROWS, LANES), jnp.float32)
        for k in range(K):
            src = hm if k == PAD else pltpu.roll(
                hm, shift=(PAD - k) % LANES, axis=1)
            if layer == 0:
                w_k = w0_ref[k]                            # (ROWS, C_IN) bf16
            else:
                w_k = wr_ref[layer - 1, k]                 # (ROWS, HID)  bf16
            acc = acc + jnp.dot(w_k, src.astype(jnp.bfloat16),
                                preferred_element_type=jnp.float32)
        bias = b0_ref[...] if layer == 0 else br_ref[layer - 1]
        acc = acc + bias                                   # (ROWS, LANES)

        # LayerNorm over channels: the channel mean is row HID of the matmul
        # (fused weight row); only the variance needs a sublane reduction.
        h = acc[:HID]                                      # (HID, LANES)
        mean = acc[HID:HID + 1]                            # (1, LANES)
        d = h - mean
        var = jnp.mean(d * d, axis=0, keepdims=True)
        h = d * lax.rsqrt(var + EPS)
        h = h * g_ref[layer] + bt_ref[layer]

        # ReLU (+ eval-mode dropout = identity).
        h = jnp.maximum(h, 0.0)

    # 1x1 projection + residual + output mask; one lane-dense unmasked store.
    proj = jnp.dot(wp_ref[...], h.astype(jnp.bfloat16),
                   preferred_element_type=jnp.float32) + bp_ref[...]
    o_ref[...] = ((x_all + proj) * m_all).astype(o_ref.dtype)


# ----------------------------- wrapper ---------------------------------------
def _to_lane_layout(a_bct):
    """(B, C, T) -> (C, B*SEG) f32 with data at lane offset PAD per segment."""
    a = jnp.transpose(a_bct, (1, 0, 2)).astype(jnp.float32)      # (C, B, T)
    a = jnp.pad(a, ((0, 0), (0, 0), (PAD, SEG - T - PAD)))       # (C, B, SEG)
    return a.reshape(a.shape[0], LANES)


@jax.jit
def conv_relu_norm(x_nct, mask_n1t, w0, b0, wr, br, gamma, beta, wp, bp):
    """x_nct: (B, C_IN, T), mask_n1t: (B, 1, T) -> (B, C_OUT, T)."""
    x_l = _to_lane_layout(x_nct)
    m_l = _to_lane_layout(mask_n1t)
    out_l = pl.pallas_call(
        conv_relu_norm_kernel,
        out_shape=jax.ShapeDtypeStruct((C_OUT, LANES), jnp.float32),
        in_specs=[pl.BlockSpec(memory_space=pltpu.MemorySpace.VMEM)] * 10,
        out_specs=pl.BlockSpec(memory_space=pltpu.MemorySpace.VMEM),
    )(x_l, m_l, w0, b0, wr, br, gamma, beta, wp, bp)
    out = out_l.reshape(C_OUT, B, SEG)[:, :, PAD:PAD + T]        # (C, B, T)
    return jnp.transpose(out, (1, 0, 2)).astype(x_nct.dtype)


# ----------------------------- weight repack ---------------------------------
def pack_params(conv_ws, conv_bs, gammas, betas, wp_pt, bp_pt):
    """PyTorch layouts -> kernel layouts (per-tap bf16 weights, fused-mean row)."""
    n_extra = ROWS - HID - 1

    def conv_pack(w, b):
        # (O, I, K) -> (K, ROWS, I); row HID is the column-mean of W (fused
        # LayerNorm mean), remaining rows are zero padding to a sublane multiple.
        wt = jnp.transpose(w, (2, 0, 1))                          # (K, O, I)
        mean_row = jnp.mean(wt, axis=1, keepdims=True)            # (K, 1, I)
        zrows = jnp.zeros((K, n_extra, wt.shape[2]), wt.dtype)
        w_aug = jnp.concatenate([wt, mean_row, zrows], axis=1)    # (K, ROWS, I)
        b_aug = jnp.concatenate(
            [b, jnp.mean(b, keepdims=True), jnp.zeros((n_extra,), b.dtype)])
        return w_aug.astype(jnp.bfloat16), b_aug[:, None].astype(jnp.float32)

    w0_k, b0_k = conv_pack(conv_ws[0], conv_bs[0])
    packed = [conv_pack(w, b) for w, b in zip(conv_ws[1:], conv_bs[1:])]
    wr_k = jnp.stack([p[0] for p in packed])                      # (L-1,K,ROWS,HID)
    br_k = jnp.stack([p[1] for p in packed])                      # (L-1, ROWS, 1)
    g_k = jnp.stack([g[:, None] for g in gammas])                 # (L, HID, 1)
    bt_k = jnp.stack([b[:, None] for b in betas])                 # (L, HID, 1)
    wp_k = wp_pt[:, :, 0].astype(jnp.bfloat16)                    # (C_OUT, HID)
    bp_k = bp_pt[:, None].astype(jnp.float32)                     # (C_OUT, 1)
    return w0_k, b0_k, wr_k, br_k, g_k, bt_k, wp_k, bp_k


# ----------------------------- reference (pure JAX) --------------------------
def ref_forward(x, mask, conv_ws, conv_bs, gammas, betas, wp_pt, bp_pt):
    """PyTorch-layout reference: x (B,C,T), mask (B,1,T)."""
    def conv1d(h, w, b, pad):
        o = lax.conv_general_dilated(
            h, w, window_strides=(1,), padding=[(pad, pad)],
            dimension_numbers=("NCH", "OIH", "NCH"))
        return o + b[None, :, None]

    x_org = x
    h = x
    for i in range(N_LAYERS):
        h = conv1d(h * mask, conv_ws[i], conv_bs[i], PAD)
        mean = jnp.mean(h, axis=1, keepdims=True)
        var = jnp.mean((h - mean) ** 2, axis=1, keepdims=True)
        h = (h - mean) * lax.rsqrt(var + EPS)
        h = h * gammas[i][None, :, None] + betas[i][None, :, None]
        h = jnp.maximum(h, 0.0)
    proj = conv1d(h, wp_pt, bp_pt, 0)
    return (x_org + proj) * mask


# ----------------------------- main ------------------------------------------
if __name__ == "__main__":
    key = jax.random.PRNGKey(0)
    keys = jax.random.split(key, 16)

    # Conv stack parameters (PyTorch layouts: Conv1d weight = (Cout, Cin, K)).
    conv_ws, conv_bs = [], []
    for i in range(N_LAYERS):
        cin = C_IN if i == 0 else HID
        bound = 1.0 / ((cin * K) ** 0.5)
        conv_ws.append(jax.random.uniform(keys[2 * i], (HID, cin, K),
                                          jnp.float32, -bound, bound))
        conv_bs.append(jax.random.uniform(keys[2 * i + 1], (HID,),
                                          jnp.float32, -bound, bound))

    # Inputs
    x = jax.random.normal(keys[6], (B, C_IN, T), jnp.float32)
    lengths = jnp.array([T, T - 5], jnp.int32)
    mask = (jnp.arange(T)[None, None, :] < lengths[:, None, None]).astype(jnp.float32)

    # ---- check 1: module-default parameters (proj zero-init, gamma=1, beta=0)
    # This path is numerically exact (zero proj contributes exactly 0).
    gam0 = [jnp.ones((HID,), jnp.float32) for _ in range(N_LAYERS)]
    bet0 = [jnp.zeros((HID,), jnp.float32) for _ in range(N_LAYERS)]
    wp0 = jnp.zeros((C_OUT, HID, 1), jnp.float32)
    bp0 = jnp.zeros((C_OUT,), jnp.float32)
    packed0 = pack_params(conv_ws, conv_bs, gam0, bet0, wp0, bp0)
    out0 = jax.block_until_ready(conv_relu_norm(x, mask, *packed0))
    ref0 = ref_forward(x, mask, conv_ws, conv_bs, gam0, bet0, wp0, bp0)
    assert out0.shape == (B, C_OUT, T), out0.shape
    assert jnp.allclose(out0, ref0, atol=1e-5, rtol=1e-5), \
        float(jnp.max(jnp.abs(out0 - ref0)))

    # ---- check 2: nonzero proj / gamma / beta so the conv + LayerNorm path is
    # actually exercised.  Tolerance is loosened because the kernel runs the
    # MXU matmuls with bf16 operands (f32 accumulation).
    gam1 = [jax.random.uniform(keys[7 + i], (HID,), jnp.float32, 0.5, 1.5)
            for i in range(N_LAYERS)]
    bet1 = [0.1 * jax.random.normal(keys[10 + i], (HID,), jnp.float32)
            for i in range(N_LAYERS)]
    wp1 = 0.3 * jax.random.normal(keys[13], (C_OUT, HID, 1), jnp.float32)
    bp1 = 0.1 * jax.random.normal(keys[14], (C_OUT,), jnp.float32)
    packed1 = pack_params(conv_ws, conv_bs, gam1, bet1, wp1, bp1)
    out1 = jax.block_until_ready(conv_relu_norm(x, mask, *packed1))
    ref1 = ref_forward(x, mask, conv_ws, conv_bs, gam1, bet1, wp1, bp1)
    # the nonzero-proj reference must differ from the trivial x*mask path
    assert float(jnp.max(jnp.abs(ref1 - x * mask))) > 1e-3
    err = float(jnp.max(jnp.abs(out1 - ref1)))
    scale = float(jnp.max(jnp.abs(ref1)))
    assert err <= 3e-2 * scale + 3e-2, (err, scale)

    print("KERNEL_OK")
</pallas_src>

<mosaic_0001>
module attributes {stable_mosaic.version = 11 : i64} {
  func.func @conv_relu_norm_kernel(%arg0: memref<8x256xf32, #tpu.memory_space<vmem>>, %arg1: memref<1x256xf32, #tpu.memory_space<vmem>>, %arg2: memref<5x40x8xbf16, #tpu.memory_space<vmem>>, %arg3: memref<40x1xf32, #tpu.memory_space<vmem>>, %arg4: memref<2x5x40x32xbf16, #tpu.memory_space<vmem>>, %arg5: memref<2x40x1xf32, #tpu.memory_space<vmem>>, %arg6: memref<3x32x1xf32, #tpu.memory_space<vmem>>, %arg7: memref<3x32x1xf32, #tpu.memory_space<vmem>>, %arg8: memref<8x32xbf16, #tpu.memory_space<vmem>>, %arg9: memref<8x1xf32, #tpu.memory_space<vmem>>, %arg10: memref<8x256xf32, #tpu.memory_space<vmem>>) attributes {dimension_semantics = [], scalar_prefetch = 0 : i64, scratch_operands = 0 : i64, tpu.core_type = #tpu.core_type<tc>} {
    %c0 = arith.constant 0 : index
    %c0_0 = arith.constant 0 : index
    %0 = vector.load %arg0[%c0, %c0_0] : memref<8x256xf32, #tpu.memory_space<vmem>>, vector<8x256xf32>
    %c0_1 = arith.constant 0 : index
    %c0_2 = arith.constant 0 : index
    %1 = vector.load %arg1[%c0_1, %c0_2] : memref<1x256xf32, #tpu.memory_space<vmem>>, vector<1x256xf32>
    %2 = vector.broadcast %1 : vector<1x256xf32> to vector<8x256xf32>
    %3 = arith.mulf %0, %2 : vector<8x256xf32>
    %cst = arith.constant 0.000000e+00 : f32
    %4 = vector.broadcast %cst : f32 to vector<40x256xf32>
    %c2_i32 = arith.constant 2 : i32
    %5 = tpu.dynamic_rotate %3 by %c2_i32 dim 1 : vector<8x256xf32>, i32 -> vector<8x256xf32>
    %c0_3 = arith.constant 0 : index
    %c0_4 = arith.constant 0 : index
    %c0_5 = arith.constant 0 : index
    %6 = vector.load %arg2[%c0_3, %c0_4, %c0_5] : memref<5x40x8xbf16, #tpu.memory_space<vmem>>, vector<1x40x8xbf16>
    %7 = vector.shape_cast %6 : vector<1x40x8xbf16> to vector<40x8xbf16>
    %8 = arith.truncf %5 : vector<8x256xf32> to vector<8x256xbf16>
    %cst_6 = arith.constant dense<0.000000e+00> : vector<40x256xf32>
    %9 = tpu.matmul %7, %8, %cst_6 {dimension_numbers = #tpu.dot_dimension_numbers<[1], [0], [0], [1], [0, 0, 1, 1], [], []>} : vector<40x8xbf16>, vector<8x256xbf16>, vector<40x256xf32> -> vector<40x256xf32>
    %10 = arith.addf %4, %9 : vector<40x256xf32>
    %c1_i32 = arith.constant 1 : i32
    %11 = tpu.dynamic_rotate %3 by %c1_i32 dim 1 : vector<8x256xf32>, i32 -> vector<8x256xf32>
    %c1 = arith.constant 1 : index
    %c0_7 = arith.constant 0 : index
    %c0_8 = arith.constant 0 : index
    %12 = vector.load %arg2[%c1, %c0_7, %c0_8] : memref<5x40x8xbf16, #tpu.memory_space<vmem>>, vector<1x40x8xbf16>
    %13 = vector.shape_cast %12 : vector<1x40x8xbf16> to vector<40x8xbf16>
    %14 = arith.truncf %11 : vector<8x256xf32> to vector<8x256xbf16>
    %cst_9 = arith.constant dense<0.000000e+00> : vector<40x256xf32>
    %15 = tpu.matmul %13, %14, %cst_9 {dimension_numbers = #tpu.dot_dimension_numbers<[1], [0], [0], [1], [0, 0, 1, 1], [], []>} : vector<40x8xbf16>, vector<8x256xbf16>, vector<40x256xf32> -> vector<40x256xf32>
    %16 = arith.addf %10, %15 : vector<40x256xf32>
    %c2 = arith.constant 2 : index
    %c0_10 = arith.constant 0 : index
    %c0_11 = arith.constant 0 : index
    %17 = vector.load %arg2[%c2, %c0_10, %c0_11] : memref<5x40x8xbf16, #tpu.memory_space<vmem>>, vector<1x40x8xbf16>
    %18 = vector.shape_cast %17 : vector<1x40x8xbf16> to vector<40x8xbf16>
    %19 = arith.truncf %3 : vector<8x256xf32> to vector<8x256xbf16>
    %cst_12 = arith.constant dense<0.000000e+00> : vector<40x256xf32>
    %20 = tpu.matmul %18, %19, %cst_12 {dimension_numbers = #tpu.dot_dimension_numbers<[1], [0], [0], [1], [0, 0, 1, 1], [], []>} : vector<40x8xbf16>, vector<8x256xbf16>, vector<40x256xf32> -> vector<40x256xf32>
    %21 = arith.addf %16, %20 : vector<40x256xf32>
    %c255_i32 = arith.constant 255 : i32
    %22 = tpu.dynamic_rotate %3 by %c255_i32 dim 1 : vector<8x256xf32>, i32 -> vector<8x256xf32>
    %c3 = arith.constant 3 : index
    %c0_13 = arith.constant 0 : index
    %c0_14 = arith.constant 0 : index
    %23 = vector.load %arg2[%c3, %c0_13, %c0_14] : memref<5x40x8xbf16, #tpu.memory_space<vmem>>, vector<1x40x8xbf16>
    %24 = vector.shape_cast %23 : vector<1x40x8xbf16> to vector<40x8xbf16>
    %25 = arith.truncf %22 : vector<8x256xf32> to vector<8x256xbf16>
    %cst_15 = arith.constant dense<0.000000e+00> : vector<40x256xf32>
    %26 = tpu.matmul %24, %25, %cst_15 {dimension_numbers = #tpu.dot_dimension_numbers<[1], [0], [0], [1], [0, 0, 1, 1], [], []>} : vector<40x8xbf16>, vector<8x256xbf16>, vector<40x256xf32> -> vector<40x256xf32>
    %27 = arith.addf %21, %26 : vector<40x256xf32>
    %c254_i32 = arith.constant 254 : i32
    %28 = tpu.dynamic_rotate %3 by %c254_i32 dim 1 : vector<8x256xf32>, i32 -> vector<8x256xf32>
    %c4 = arith.constant 4 : index
    %c0_16 = arith.constant 0 : index
    %c0_17 = arith.constant 0 : index
    %29 = vector.load %arg2[%c4, %c0_16, %c0_17] : memref<5x40x8xbf16, #tpu.memory_space<vmem>>, vector<1x40x8xbf16>
    %30 = vector.shape_cast %29 : vector<1x40x8xbf16> to vector<40x8xbf16>
    %31 = arith.truncf %28 : vector<8x256xf32> to vector<8x256xbf16>
    %cst_18 = arith.constant dense<0.000000e+00> : vector<40x256xf32>
    %32 = tpu.matmul %30, %31, %cst_18 {dimension_numbers = #tpu.dot_dimension_numbers<[1], [0], [0], [1], [0, 0, 1, 1], [], []>} : vector<40x8xbf16>, vector<8x256xbf16>, vector<40x256xf32> -> vector<40x256xf32>
    %33 = arith.addf %27, %32 : vector<40x256xf32>
    %c0_19 = arith.constant 0 : index
    %c0_20 = arith.constant 0 : index
    %34 = vector.load %arg3[%c0_19, %c0_20] : memref<40x1xf32, #tpu.memory_space<vmem>>, vector<40x1xf32>
    %35 = vector.broadcast %34 : vector<40x1xf32> to vector<40x256xf32>
    %36 = arith.addf %33, %35 : vector<40x256xf32>
    %37 = vector.extract_strided_slice %36 {offsets = [0, 0], sizes = [32, 256], strides = [1, 1]} : vector<40x256xf32> to vector<32x256xf32>
    %38 = vector.extract_strided_slice %36 {offsets = [32, 0], sizes = [1, 256], strides = [1, 1]} : vector<40x256xf32> to vector<1x256xf32>
    %39 = vector.broadcast %38 : vector<1x256xf32> to vector<32x256xf32>
    %40 = arith.subf %37, %39 : vector<32x256xf32>
    %41 = arith.mulf %40, %40 : vector<32x256xf32>
    %cst_21 = arith.constant dense<0.000000e+00> : vector<256xf32>
    %42 = vector.multi_reduction <add>, %41, %cst_21 [0] : vector<32x256xf32> to vector<256xf32>
    %43 = vector.shape_cast %42 : vector<256xf32> to vector<1x256xf32>
    %cst_22 = arith.constant 3.200000e+01 : f32
    %44 = vector.broadcast %cst_22 : f32 to vector<1x256xf32>
    %45 = arith.divf %43, %44 : vector<1x256xf32>
    %cst_23 = arith.constant 9.99999974E-5 : f32
    %46 = vector.broadcast %cst_23 : f32 to vector<1x256xf32>
    %47 = arith.addf %45, %46 : vector<1x256xf32>
    %48 = math.rsqrt %47 : vector<1x256xf32>
    %49 = vector.broadcast %48 : vector<1x256xf32> to vector<32x256xf32>
    %50 = arith.mulf %40, %49 : vector<32x256xf32>
    %c0_24 = arith.constant 0 : index
    %c0_25 = arith.constant 0 : index
    %c0_26 = arith.constant 0 : index
    %51 = vector.load %arg6[%c0_24, %c0_25, %c0_26] : memref<3x32x1xf32, #tpu.memory_space<vmem>>, vector<1x32x1xf32>
    %52 = vector.shape_cast %51 : vector<1x32x1xf32> to vector<32x1xf32>
    %53 = vector.broadcast %52 : vector<32x1xf32> to vector<32x256xf32>
    %54 = arith.mulf %50, %53 : vector<32x256xf32>
    %c0_27 = arith.constant 0 : index
    %c0_28 = arith.constant 0 : index
    %c0_29 = arith.constant 0 : index
    %55 = vector.load %arg7[%c0_27, %c0_28, %c0_29] : memref<3x32x1xf32, #tpu.memory_space<vmem>>, vector<1x32x1xf32>
    %56 = vector.shape_cast %55 : vector<1x32x1xf32> to vector<32x1xf32>
    %57 = vector.broadcast %56 : vector<32x1xf32> to vector<32x256xf32>
    %58 = arith.addf %54, %57 : vector<32x256xf32>
    %cst_30 = arith.constant 0.000000e+00 : f32
    %59 = vector.broadcast %cst_30 : f32 to vector<32x256xf32>
    %60 = arith.maximumf %58, %59 : vector<32x256xf32>
    %61 = vector.broadcast %1 : vector<1x256xf32> to vector<32x256xf32>
    %62 = arith.mulf %60, %61 : vector<32x256xf32>
    %cst_31 = arith.constant 0.000000e+00 : f32
    %63 = vector.broadcast %cst_31 : f32 to vector<40x256xf32>
    %c2_i32_32 = arith.constant 2 : i32
    %64 = tpu.dynamic_rotate %62 by %c2_i32_32 dim 1 : vector<32x256xf32>, i32 -> vector<32x256xf32>
    %c0_33 = arith.constant 0 : index
    %c0_34 = arith.constant 0 : index
    %c0_35 = arith.constant 0 : index
    %c0_36 = arith.constant 0 : index
    %65 = vector.load %arg4[%c0_33, %c0_34, %c0_35, %c0_36] : memref<2x5x40x32xbf16, #tpu.memory_space<vmem>>, vector<1x1x40x32xbf16>
    %66 = vector.shape_cast %65 : vector<1x1x40x32xbf16> to vector<40x32xbf16>
    %67 = arith.truncf %64 : vector<32x256xf32> to vector<32x256xbf16>
    %cst_37 = arith.constant dense<0.000000e+00> : vector<40x256xf32>
    %68 = tpu.matmul %66, %67, %cst_37 {dimension_numbers = #tpu.dot_dimension_numbers<[1], [0], [0], [1], [0, 0, 1, 1], [], []>} : vector<40x32xbf16>, vector<32x256xbf16>, vector<40x256xf32> -> vector<40x256xf32>
    %69 = arith.addf %63, %68 : vector<40x256xf32>
    %c1_i32_38 = arith.constant 1 : i32
    %70 = tpu.dynamic_rotate %62 by %c1_i32_38 dim 1 : vector<32x256xf32>, i32 -> vector<32x256xf32>
    %c0_39 = arith.constant 0 : index
    %c1_40 = arith.constant 1 : index
    %c0_41 = arith.constant 0 : index
    %c0_42 = arith.constant 0 : index
    %71 = vector.load %arg4[%c0_39, %c1_40, %c0_41, %c0_42] : memref<2x5x40x32xbf16, #tpu.memory_space<vmem>>, vector<1x1x40x32xbf16>
    %72 = vector.shape_cast %71 : vector<1x1x40x32xbf16> to vector<40x32xbf16>
    %73 = arith.truncf %70 : vector<32x256xf32> to vector<32x256xbf16>
    %cst_43 = arith.constant dense<0.000000e+00> : vector<40x256xf32>
    %74 = tpu.matmul %72, %73, %cst_43 {dimension_numbers = #tpu.dot_dimension_numbers<[1], [0], [0], [1], [0, 0, 1, 1], [], []>} : vector<40x32xbf16>, vector<32x256xbf16>, vector<40x256xf32> -> vector<40x256xf32>
    %75 = arith.addf %69, %74 : vector<40x256xf32>
    %c0_44 = arith.constant 0 : index
    %c2_45 = arith.constant 2 : index
    %c0_46 = arith.constant 0 : index
    %c0_47 = arith.constant 0 : index
    %76 = vector.load %arg4[%c0_44, %c2_45, %c0_46, %c0_47] : memref<2x5x40x32xbf16, #tpu.memory_space<vmem>>, vector<1x1x40x32xbf16>
    %77 = vector.shape_cast %76 : vector<1x1x40x32xbf16> to vector<40x32xbf16>
    %78 = arith.truncf %62 : vector<32x256xf32> to vector<32x256xbf16>
    %cst_48 = arith.constant dense<0.000000e+00> : vector<40x256xf32>
    %79 = tpu.matmul %77, %78, %cst_48 {dimension_numbers = #tpu.dot_dimension_numbers<[1], [0], [0], [1], [0, 0, 1, 1], [], []>} : vector<40x32xbf16>, vector<32x256xbf16>, vector<40x256xf32> -> vector<40x256xf32>
    %80 = arith.addf %75, %79 : vector<40x256xf32>
    %c255_i32_49 = arith.constant 255 : i32
    %81 = tpu.dynamic_rotate %62 by %c255_i32_49 dim 1 : vector<32x256xf32>, i32 -> vector<32x256xf32>
    %c0_50 = arith.constant 0 : index
    %c3_51 = arith.constant 3 : index
    %c0_52 = arith.constant 0 : index
    %c0_53 = arith.constant 0 : index
    %82 = vector.load %arg4[%c0_50, %c3_51, %c0_52, %c0_53] : memref<2x5x40x32xbf16, #tpu.memory_space<vmem>>, vector<1x1x40x32xbf16>
    %83 = vector.shape_cast %82 : vector<1x1x40x32xbf16> to vector<40x32xbf16>
    %84 = arith.truncf %81 : vector<32x256xf32> to vector<32x256xbf16>
    %cst_54 = arith.constant dense<0.000000e+00> : vector<40x256xf32>
    %85 = tpu.matmul %83, %84, %cst_54 {dimension_numbers = #tpu.dot_dimension_numbers<[1], [0], [0], [1], [0, 0, 1, 1], [], []>} : vector<40x32xbf16>, vector<32x256xbf16>, vector<40x256xf32> -> vector<40x256xf32>
    %86 = arith.addf %80, %85 : vector<40x256xf32>
    %c254_i32_55 = arith.constant 254 : i32
    %87 = tpu.dynamic_rotate %62 by %c254_i32_55 dim 1 : vector<32x256xf32>, i32 -> vector<32x256xf32>
    %c0_56 = arith.constant 0 : index
    %c4_57 = arith.constant 4 : index
    %c0_58 = arith.constant 0 : index
    %c0_59 = arith.constant 0 : index
    %88 = vector.load %arg4[%c0_56, %c4_57, %c0_58, %c0_59] : memref<2x5x40x32xbf16, #tpu.memory_space<vmem>>, vector<1x1x40x32xbf16>
    %89 = vector.shape_cast %88 : vector<1x1x40x32xbf16> to vector<40x32xbf16>
    %90 = arith.truncf %87 : vector<32x256xf32> to vector<32x256xbf16>
    %cst_60 = arith.constant dense<0.000000e+00> : vector<40x256xf32>
    %91 = tpu.matmul %89, %90, %cst_60 {dimension_numbers = #tpu.dot_dimension_numbers<[1], [0], [0], [1], [0, 0, 1, 1], [], []>} : vector<40x32xbf16>, vector<32x256xbf16>, vector<40x256xf32> -> vector<40x256xf32>
    %92 = arith.addf %86, %91 : vector<40x256xf32>
    %c0_61 = arith.constant 0 : index
    %c0_62 = arith.constant 0 : index
    %c0_63 = arith.constant 0 : index
    %93 = vector.load %arg5[%c0_61, %c0_62, %c0_63] : memref<2x40x1xf32, #tpu.memory_space<vmem>>, vector<1x40x1xf32>
    %94 = vector.shape_cast %93 : vector<1x40x1xf32> to vector<40x1xf32>
    %95 = vector.broadcast %94 : vector<40x1xf32> to vector<40x256xf32>
    %96 = arith.addf %92, %95 : vector<40x256xf32>
    %97 = vector.extract_strided_slice %96 {offsets = [0, 0], sizes = [32, 256], strides = [1, 1]} : vector<40x256xf32> to vector<32x256xf32>
    %98 = vector.extract_strided_slice %96 {offsets = [32, 0], sizes = [1, 256], strides = [1, 1]} : vector<40x256xf32> to vector<1x256xf32>
    %99 = vector.broadcast %98 : vector<1x256xf32> to vector<32x256xf32>
    %100 = arith.subf %97, %99 : vector<32x256xf32>
    %101 = arith.mulf %100, %100 : vector<32x256xf32>
    %cst_64 = arith.constant dense<0.000000e+00> : vector<256xf32>
    %102 = vector.multi_reduction <add>, %101, %cst_64 [0] : vector<32x256xf32> to vector<256xf32>
    %103 = vector.shape_cast %102 : vector<256xf32> to vector<1x256xf32>
    %cst_65 = arith.constant 3.200000e+01 : f32
    %104 = vector.broadcast %cst_65 : f32 to vector<1x256xf32>
    %105 = arith.divf %103, %104 : vector<1x256xf32>
    %cst_66 = arith.constant 9.99999974E-5 : f32
    %106 = vector.broadcast %cst_66 : f32 to vector<1x256xf32>
    %107 = arith.addf %105, %106 : vector<1x256xf32>
    %108 = math.rsqrt %107 : vector<1x256xf32>
    %109 = vector.broadcast %108 : vector<1x256xf32> to vector<32x256xf32>
    %110 = arith.mulf %100, %109 : vector<32x256xf32>
    %c1_67 = arith.constant 1 : index
    %c0_68 = arith.constant 0 : index
    %c0_69 = arith.constant 0 : index
    %111 = vector.load %arg6[%c1_67, %c0_68, %c0_69] : memref<3x32x1xf32, #tpu.memory_space<vmem>>, vector<1x32x1xf32>
    %112 = vector.shape_cast %111 : vector<1x32x1xf32> to vector<32x1xf32>
    %113 = vector.broadcast %112 : vector<32x1xf32> to vector<32x256xf32>
    %114 = arith.mulf %110, %113 : vector<32x256xf32>
    %c1_70 = arith.constant 1 : index
    %c0_71 = arith.constant 0 : index
    %c0_72 = arith.constant 0 : index
    %115 = vector.load %arg7[%c1_70, %c0_71, %c0_72] : memref<3x32x1xf32, #tpu.memory_space<vmem>>, vector<1x32x1xf32>
    %116 = vector.shape_cast %115 : vector<1x32x1xf32> to vector<32x1xf32>
    %117 = vector.broadcast %116 : vector<32x1xf32> to vector<32x256xf32>
    %118 = arith.addf %114, %117 : vector<32x256xf32>
    %cst_73 = arith.constant 0.000000e+00 : f32
    %119 = vector.broadcast %cst_73 : f32 to vector<32x256xf32>
    %120 = arith.maximumf %118, %119 : vector<32x256xf32>
    %121 = vector.broadcast %1 : vector<1x256xf32> to vector<32x256xf32>
    %122 = arith.mulf %120, %121 : vector<32x256xf32>
    %cst_74 = arith.constant 0.000000e+00 : f32
    %123 = vector.broadcast %cst_74 : f32 to vector<40x256xf32>
    %c2_i32_75 = arith.constant 2 : i32
    %124 = tpu.dynamic_rotate %122 by %c2_i32_75 dim 1 : vector<32x256xf32>, i32 -> vector<32x256xf32>
    %c1_76 = arith.constant 1 : index
    %c0_77 = arith.constant 0 : index
    %c0_78 = arith.constant 0 : index
    %c0_79 = arith.constant 0 : index
    %125 = vector.load %arg4[%c1_76, %c0_77, %c0_78, %c0_79] : memref<2x5x40x32xbf16, #tpu.memory_space<vmem>>, vector<1x1x40x32xbf16>
    %126 = vector.shape_cast %125 : vector<1x1x40x32xbf16> to vector<40x32xbf16>
    %127 = arith.truncf %124 : vector<32x256xf32> to vector<32x256xbf16>
    %cst_80 = arith.constant dense<0.000000e+00> : vector<40x256xf32>
    %128 = tpu.matmul %126, %127, %cst_80 {dimension_numbers = #tpu.dot_dimension_numbers<[1], [0], [0], [1], [0, 0, 1, 1], [], []>} : vector<40x32xbf16>, vector<32x256xbf16>, vector<40x256xf32> -> vector<40x256xf32>
    %129 = arith.addf %123, %128 : vector<40x256xf32>
    %c1_i32_81 = arith.constant 1 : i32
    %130 = tpu.dynamic_rotate %122 by %c1_i32_81 dim 1 : vector<32x256xf32>, i32 -> vector<32x256xf32>
    %c1_82 = arith.constant 1 : index
    %c1_83 = arith.constant 1 : index
    %c0_84 = arith.constant 0 : index
    %c0_85 = arith.constant 0 : index
    %131 = vector.load %arg4[%c1_82, %c1_83, %c0_84, %c0_85] : memref<2x5x40x32xbf16, #tpu.memory_space<vmem>>, vector<1x1x40x32xbf16>
    %132 = vector.shape_cast %131 : vector<1x1x40x32xbf16> to vector<40x32xbf16>
    %133 = arith.truncf %130 : vector<32x256xf32> to vector<32x256xbf16>
    %cst_86 = arith.constant dense<0.000000e+00> : vector<40x256xf32>
    %134 = tpu.matmul %132, %133, %cst_86 {dimension_numbers = #tpu.dot_dimension_numbers<[1], [0], [0], [1], [0, 0, 1, 1], [], []>} : vector<40x32xbf16>, vector<32x256xbf16>, vector<40x256xf32> -> vector<40x256xf32>
    %135 = arith.addf %129, %134 : vector<40x256xf32>
    %c1_87 = arith.constant 1 : index
    %c2_88 = arith.constant 2 : index
    %c0_89 = arith.constant 0 : index
    %c0_90 = arith.constant 0 : index
    %136 = vector.load %arg4[%c1_87, %c2_88, %c0_89, %c0_90] : memref<2x5x40x32xbf16, #tpu.memory_space<vmem>>, vector<1x1x40x32xbf16>
    %137 = vector.shape_cast %136 : vector<1x1x40x32xbf16> to vector<40x32xbf16>
    %138 = arith.truncf %122 : vector<32x256xf32> to vector<32x256xbf16>
    %cst_91 = arith.constant dense<0.000000e+00> : vector<40x256xf32>
    %139 = tpu.matmul %137, %138, %cst_91 {dimension_numbers = #tpu.dot_dimension_numbers<[1], [0], [0], [1], [0, 0, 1, 1], [], []>} : vector<40x32xbf16>, vector<32x256xbf16>, vector<40x256xf32> -> vector<40x256xf32>
    %140 = arith.addf %135, %139 : vector<40x256xf32>
    %c255_i32_92 = arith.constant 255 : i32
    %141 = tpu.dynamic_rotate %122 by %c255_i32_92 dim 1 : vector<32x256xf32>, i32 -> vector<32x256xf32>
    %c1_93 = arith.constant 1 : index
    %c3_94 = arith.constant 3 : index
    %c0_95 = arith.constant 0 : index
    %c0_96 = arith.constant 0 : index
    %142 = vector.load %arg4[%c1_93, %c3_94, %c0_95, %c0_96] : memref<2x5x40x32xbf16, #tpu.memory_space<vmem>>, vector<1x1x40x32xbf16>
    %143 = vector.shape_cast %142 : vector<1x1x40x32xbf16> to vector<40x32xbf16>
    %144 = arith.truncf %141 : vector<32x256xf32> to vector<32x256xbf16>
    %cst_97 = arith.constant dense<0.000000e+00> : vector<40x256xf32>
    %145 = tpu.matmul %143, %144, %cst_97 {dimension_numbers = #tpu.dot_dimension_numbers<[1], [0], [0], [1], [0, 0, 1, 1], [], []>} : vector<40x32xbf16>, vector<32x256xbf16>, vector<40x256xf32> -> vector<40x256xf32>
    %146 = arith.addf %140, %145 : vector<40x256xf32>
    %c254_i32_98 = arith.constant 254 : i32
    %147 = tpu.dynamic_rotate %122 by %c254_i32_98 dim 1 : vector<32x256xf32>, i32 -> vector<32x256xf32>
    %c1_99 = arith.constant 1 : index
    %c4_100 = arith.constant 4 : index
    %c0_101 = arith.constant 0 : index
    %c0_102 = arith.constant 0 : index
    %148 = vector.load %arg4[%c1_99, %c4_100, %c0_101, %c0_102] : memref<2x5x40x32xbf16, #tpu.memory_space<vmem>>, vector<1x1x40x32xbf16>
    %149 = vector.shape_cast %148 : vector<1x1x40x32xbf16> to vector<40x32xbf16>
    %150 = arith.truncf %147 : vector<32x256xf32> to vector<32x256xbf16>
    %cst_103 = arith.constant dense<0.000000e+00> : vector<40x256xf32>
    %151 = tpu.matmul %149, %150, %cst_103 {dimension_numbers = #tpu.dot_dimension_numbers<[1], [0], [0], [1], [0, 0, 1, 1], [], []>} : vector<40x32xbf16>, vector<32x256xbf16>, vector<40x256xf32> -> vector<40x256xf32>
    %152 = arith.addf %146, %151 : vector<40x256xf32>
    %c1_104 = arith.constant 1 : index
    %c0_105 = arith.constant 0 : index
    %c0_106 = arith.constant 0 : index
    %153 = vector.load %arg5[%c1_104, %c0_105, %c0_106] : memref<2x40x1xf32, #tpu.memory_space<vmem>>, vector<1x40x1xf32>
    %154 = vector.shape_cast %153 : vector<1x40x1xf32> to vector<40x1xf32>
    %155 = vector.broadcast %154 : vector<40x1xf32> to vector<40x256xf32>
    %156 = arith.addf %152, %155 : vector<40x256xf32>
    %157 = vector.extract_strided_slice %156 {offsets = [0, 0], sizes = [32, 256], strides = [1, 1]} : vector<40x256xf32> to vector<32x256xf32>
    %158 = vector.extract_strided_slice %156 {offsets = [32, 0], sizes = [1, 256], strides = [1, 1]} : vector<40x256xf32> to vector<1x256xf32>
    %159 = vector.broadcast %158 : vector<1x256xf32> to vector<32x256xf32>
    %160 = arith.subf %157, %159 : vector<32x256xf32>
    %161 = arith.mulf %160, %160 : vector<32x256xf32>
    %cst_107 = arith.constant dense<0.000000e+00> : vector<256xf32>
    %162 = vector.multi_reduction <add>, %161, %cst_107 [0] : vector<32x256xf32> to vector<256xf32>
    %163 = vector.shape_cast %162 : vector<256xf32> to vector<1x256xf32>
    %cst_108 = arith.constant 3.200000e+01 : f32
    %164 = vector.broadcast %cst_108 : f32 to vector<1x256xf32>
    %165 = arith.divf %163, %164 : vector<1x256xf32>
    %cst_109 = arith.constant 9.99999974E-5 : f32
    %166 = vector.broadcast %cst_109 : f32 to vector<1x256xf32>
    %167 = arith.addf %165, %166 : vector<1x256xf32>
    %168 = math.rsqrt %167 : vector<1x256xf32>
    %169 = vector.broadcast %168 : vector<1x256xf32> to vector<32x256xf32>
    %170 = arith.mulf %160, %169 : vector<32x256xf32>
    %c2_110 = arith.constant 2 : index
    %c0_111 = arith.constant 0 : index
    %c0_112 = arith.constant 0 : index
    %171 = vector.load %arg6[%c2_110, %c0_111, %c0_112] : memref<3x32x1xf32, #tpu.memory_space<vmem>>, vector<1x32x1xf32>
    %172 = vector.shape_cast %171 : vector<1x32x1xf32> to vector<32x1xf32>
    %173 = vector.broadcast %172 : vector<32x1xf32> to vector<32x256xf32>
    %174 = arith.mulf %170, %173 : vector<32x256xf32>
    %c2_113 = arith.constant 2 : index
    %c0_114 = arith.constant 0 : index
    %c0_115 = arith.constant 0 : index
    %175 = vector.load %arg7[%c2_113, %c0_114, %c0_115] : memref<3x32x1xf32, #tpu.memory_space<vmem>>, vector<1x32x1xf32>
    %176 = vector.shape_cast %175 : vector<1x32x1xf32> to vector<32x1xf32>
    %177 = vector.broadcast %176 : vector<32x1xf32> to vector<32x256xf32>
    %178 = arith.addf %174, %177 : vector<32x256xf32>
    %cst_116 = arith.constant 0.000000e+00 : f32
    %179 = vector.broadcast %cst_116 : f32 to vector<32x256xf32>
    %180 = arith.maximumf %178, %179 : vector<32x256xf32>
    %c0_117 = arith.constant 0 : index
    %c0_118 = arith.constant 0 : index
    %181 = vector.load %arg8[%c0_117, %c0_118] : memref<8x32xbf16, #tpu.memory_space<vmem>>, vector<8x32xbf16>
    %182 = arith.truncf %180 : vector<32x256xf32> to vector<32x256xbf16>
    %cst_119 = arith.constant dense<0.000000e+00> : vector<8x256xf32>
    %183 = tpu.matmul %181, %182, %cst_119 {dimension_numbers = #tpu.dot_dimension_numbers<[1], [0], [0], [1], [0, 0, 1, 1], [], []>} : vector<8x32xbf16>, vector<32x256xbf16>, vector<8x256xf32> -> vector<8x256xf32>
    %c0_120 = arith.constant 0 : index
    %c0_121 = arith.constant 0 : index
    %184 = vector.load %arg9[%c0_120, %c0_121] : memref<8x1xf32, #tpu.memory_space<vmem>>, vector<8x1xf32>
    %185 = vector.broadcast %184 : vector<8x1xf32> to vector<8x256xf32>
    %186 = arith.addf %183, %185 : vector<8x256xf32>
    %187 = arith.addf %0, %186 : vector<8x256xf32>
    %188 = vector.broadcast %1 : vector<1x256xf32> to vector<8x256xf32>
    %189 = arith.mulf %187, %188 : vector<8x256xf32>
    %c0_122 = arith.constant 0 : index
    %c0_123 = arith.constant 0 : index
    %190 = vector.load %arg10[%c0_122, %c0_123] : memref<8x256xf32, #tpu.memory_space<vmem>>, vector<8x256xf32>
    tpu.vector_store %arg10[%c0_122, %c0_123], %189 {strides = array<i32>} : memref<8x256xf32, #tpu.memory_space<vmem>>, vector<8x256xf32>,
    return
  }
}

</mosaic_0001>

<bundles_post_ra>
// kernel: conv_relu_norm.1
= control target key start
LH: loop header
LB: loop body
LE: loop exit
PB: predicated region body
PF: predicated region fallthrough
CT: control target
= control target key end

     0   :  { %v40_v0 = vlaneseq  ;;  %v2897_v1 = vmov 0   ;;  %vm106_vm0 = vcmask 1043456   ;;  %s2899_s19 = smov 2   ;;  %vm96_vm1 = vcmask 64512   ;;  %s2900_s22 = smov 127   ;;  %s3658_s1 = inlined_call_operand.vmem [shape: f32[1,256], index: 1, kind: input, shape index: {}]   ;;  %s3659_s0 = inlined_call_operand.vmem [shape: f32[8,256], index: 0, kind: input, shape index: {}]   ;;  %s3660_s2 = inlined_call_operand.vmem [shape: bf16[5,40,8], index: 2, kind: input, shape index: {}]   ;;  %s3661_s3 = inlined_call_operand.vmem [shape: f32[40,1], index: 3, kind: input, shape index: {}]   ;;  %s3662_s6 = inlined_call_operand.vmem [shape: f32[3,32,1], index: 6, kind: input, shape index: {}]   ;;  %s3663_s7 = inlined_call_operand.vmem [shape: f32[3,32,1], index: 7, kind: input, shape index: {}]   ;;  %s3664_s4 = inlined_call_operand.vmem [shape: bf16[2,5,40,32], index: 4, kind: input, shape index: {}]   ;;  %s3665_s5 = inlined_call_operand.vmem [shape: f32[2,40,1], index: 5, kind: input, shape index: {}]   ;;  %s3666_s9 = inlined_call_operand.vmem [shape: f32[8,1], index: 9, kind: input, shape index: {}]   ;;  %s3667_s8 = inlined_call_operand.vmem [shape: bf16[8,32], index: 8, kind: input, shape index: {}]   ;;  %s3668_s10 = inlined_call_operand.vmem [shape: f32[8,256], index: 10, kind: output, shape index: {}]  }
   0x1   :  { %331 = vmatprep.mubr.bf16.mxu0 %v2897_v1  ;;  %145 = vmatprep.mubr.bf16.mxu1 %v2897_v1  ;;  %v38_v3 = vld [vmem:[%s3658_s1] sm:$0x3]  ;;  %v37_v7 = vld [vmem:[%s3659_s0 + $0x8] sm:$0xff]  ;;  %s2898_s1 = smov 1   ;;  %s2901_s23 = smov 126   ;;  %v2839_v17 = vld [vmem:[%s3660_s2 + $0x30] sm:$0xff]  }
   0x2   :  { %v41_v2 = vshrl.u32 %v40_v0, 7  ;;  %2677 = vset.pattern.permute.xlu1 %v2897_v1  ;;  %2676 = vset.pattern.permute.xlu0 %v2897_v1  ;;  %v36_v4 = vld [vmem:[%s3659_s0] sm:$0xff]  ;;  %v2838_v16 = vld [vmem:[%s3660_s2 + $0x28] sm:$0xff]   ;;  %v600_v21 = vld [vmem:[%s3661_s3 + $0x10] sm:$0xff]  ;;  %v3042_v31 = vand.u32 127, %v40_v0  ;;  %vm855_vm6 = vcmask 261120  }
   0x3   :  { %v598_v18 = vld [vmem:[%s3661_s3] sm:$0xff]  ;;  %v599_v20 = vld [vmem:[%s3661_s3 + $0x8] sm:$0xff]  ;;  %v601_v22 = vld [vmem:[%s3661_s3 + $0x18] sm:$0xff] }
   0x4   :  { %v2968_v5 = vsub.s32 0, %v41_v2  ;;  %v46_v6 = vsub.s32 1, %v41_v2  ;;  %v602_v19 = vld [vmem:[%s3661_s3 + $0x20] sm:$0xff]  ;;  %v696_v24 = vld [vmem:[%s3662_s6 + $0x8] sm:$0xff]  ;;  %v697_v27 = vld [vmem:[%s3662_s6 + $0x10] sm:$0xff]  ;;  %vm58_vm2 = vcmp.lt.s32.totalorder %v3042_v31, 2 }
   0x5   :  { %v695_v23 = vld [vmem:[%s3662_s6] sm:$0xff]  ;;  %v728_v26 = vld [vmem:[%s3663_s7 + $0x8] sm:$0xff]  ;;  %v698_v28 = vld [vmem:[%s3662_s6 + $0x18] sm:$0xff]  ;;  %vm72_vm3 = vcmp.lt.s32.totalorder %v3042_v31, 1  ;;  %vm374_vm4 = vcmp.lt.s32.totalorder %v3042_v31, 127  ;;  %vm488_vm5 = vcmp.lt.s32.totalorder %v3042_v31, 126 }
   0x6   :  { %v2974_v8 = vrot.slane %v38_v3, %v2968_v5  ;;  %v2976_v9 = vrot.slane %v38_v3, %v46_v6  ;;  %v727_v25 = vld [vmem:[%s3663_s7] sm:$0xff]  ;;  %v729_v29 = vld [vmem:[%s3663_s7 + $0x10] sm:$0xff]  ;;  %v730_v30 = vld [vmem:[%s3663_s7 + $0x18] sm:$0xff] }
   0x7   :  { %v2840_v53 = vld [vmem:[%s3660_s2 + $0x14] sm:$0xff]   ;;  %v2841_v0 = vld [vmem:[%s3660_s2 + $0x3c] sm:$0xff]   ;;  %v2844_v6 = vld [vmem:[%s3660_s2 + $0x24] ss:$0 sps:$4 sm:$0xff]  }
   0x8   :  { %v50_v10 = vmul.f32 %v2974_v8, %v36_v4  ;;  %v51_v11 = vmul.f32 %v2976_v9, %v37_v7  ;;  %v2842_v3 = vld [vmem:[%s3660_s2 + $0x1c] sm:$0xff]   ;;  %v2843_v4 = vld [vmem:[%s3660_s2 + $0x44] sm:$0xff]   ;;  %v2845_v7 = vld [vmem:[%s3660_s2 + $0x4c] ss:$0 sps:$4 sm:$0xff]  }
   0x9   :  { %v2879_v31 = vld [vmem:[%s3664_s4 + $0xb0] ss:$0 sps:$4 sm:$0xff]  }
   0xa   :  { %v2656_v12 = vpack.i.bf16 %v51_v11, %v50_v10  ;;  %v2980_v13 = vpack.c.bf16 %v51_v11, %v51_v11  ;;  %v269_v14 = vpack.c.bf16 %v50_v10, %v50_v10  ;;  %v2846_v10 = vld [vmem:[%s3660_s2] sm:$0xff]   ;;  %v2847_v11 = vld [vmem:[%s3660_s2 + $0x50] sm:$0xff]  }
   0xc   :  { %2657 = vrot.lane.b32.xlu0 %v2656_v12, %s2898_s1  ;;  %2667 = vrot.lane.b32.xlu1 %v2656_v12, %s2899_s19  ;;  %v2987_v15 = vsel %vm106_vm0, %v269_v14, 0  ;;  %v2850_v14 = vld [vmem:[%s3660_s2 + $0x10] ss:$0 sps:$4 sm:$0xff]  }
   0xd   :  { %2398 = vmatprep.subr.msk.bf16.mxu0 %vm106_vm0, %v2980_v13 }
   0xe   :  { %300 = vmatpush1.bf16.msra.mxu0 %v2987_v15 }
  0x10   :  { %2662 = vrot.lane.b32.xlu0 %v2656_v12, %s2900_s22  ;;  %2672 = vrot.lane.b32.xlu1 %v2656_v12, %s2901_s23  ;;  %v2848_v12 = vld [vmem:[%s3660_s2 + $0x8] sm:$0xff]  }
  0x11   :  { %2399 = vmatmul.mubr.msk.bf16.vlgmr.msra.gmra.mrb[0].mxu0 %vm96_vm1, %v2838_v16  ;;  %v2851_v16 = vld [vmem:[%s3660_s2 + $0x38] ss:$0 sps:$4 sm:$0xff]  }
  0x12   :  { %341 = vmatprep.mubr.bf16.mxu0 %v2897_v1 }
  0x14   :  { %605 = vperm.xlu1 %2677, %v598_v18   ;;  %625 = vperm.xlu0 %2676, %v602_v19  }
  0x18   :  { %610 = vperm.xlu1 %2677, %v599_v20   ;;  %615 = vperm.xlu0 %2676, %v600_v21  }
  0x19   :  { %2400 = vmatmul.mubr.msk.bf16.gmra.mrb[4].mxu0 %vm96_vm1, %v2839_v17 }
  0x1a   :  { %445 = vmatprep.mubr.bf16.mxu0 %v2897_v1 }
  0x1c   :  { %620 = vperm.xlu1 %2677, %v601_v22   ;;  %701 = vperm.xlu0 %2676, %v695_v23  }
  0x20   :  { %706 = vperm.xlu1 %2677, %v696_v24   ;;  %733 = vperm.xlu0 %2676, %v727_v25  }
  0x24   :  { %738 = vperm.xlu1 %2677, %v728_v26   ;;  %711 = vperm.xlu0 %2676, %v697_v27  }
  0x28   :  { %716 = vperm.xlu1 %2677, %v698_v28   ;;  %743 = vperm.xlu0 %2676, %v729_v29  }
  0x2c   :  { %748 = vperm.xlu1 %2677, %v730_v30  }
  0x7e   :  { %v2658_v32 = vpop.permute.xlu0 %2657  ;;  %v2668_v33 = vpop.permute.xlu1 %2667 }
  0x7f   :  { %v2660_v34 = vunpack.i.h.bf16 %v2658_v32  ;;  %v2659_v35 = vunpack.i.l.bf16 %v2658_v32  ;;  %v2670_v36 = vunpack.i.h.bf16 %v2668_v33  ;;  %v2669_v37 = vunpack.i.l.bf16 %v2668_v33 }
  0x81   :  { %v73_v38 = vsel %vm72_vm3, %v2659_v35, %v2660_v34  ;;  %v74_v39 = vsel %vm72_vm3, %v2660_v34, %v2659_v35  ;;  %v59_v40 = vsel %vm58_vm2, %v2669_v37, %v2670_v36  ;;  %v60_v41 = vsel %vm58_vm2, %v2670_v36, %v2669_v37 }
  0x82   :  { %v2663_v42 = vpop.permute.xlu0 %2662  ;;  %v82_v43 = vpack.c.bf16 %v73_v38, %v73_v38  ;;  %v81_v44 = vpack.c.bf16 %v74_v39, %v74_v39  ;;  %v67_v45 = vpack.c.bf16 %v59_v40, %v59_v40  ;;  %v66_v46 = vpack.c.bf16 %v60_v41, %v60_v41  ;;  %v2673_v47 = vpop.permute.xlu1 %2672 }
  0x83   :  { %v2665_v48 = vunpack.i.h.bf16 %v2663_v42  ;;  %v2664_v49 = vunpack.i.l.bf16 %v2663_v42  ;;  %v2675_v50 = vunpack.i.h.bf16 %v2673_v47  ;;  %v2674_v51 = vunpack.i.l.bf16 %v2673_v47 }
  0x84   :  { %2379 = vmatprep.subr.msk.bf16.mxu1 %vm106_vm0, %v82_v43  ;;  %v108_v52 = vsel %vm106_vm0, %v81_v44, 0  ;;  %v197_v62 = vsel %vm106_vm0, %v66_v46, 0 }
  0x85   :  { %v376_v54 = vsel %vm374_vm4, %v2665_v48, %v2664_v49  ;;  %114 = vmatpush1.bf16.msra.mxu1 %v108_v52  ;;  %v375_v55 = vsel %vm374_vm4, %v2664_v49, %v2665_v48  ;;  %v490_v56 = vsel %vm488_vm5, %v2675_v50, %v2674_v51  ;;  %v489_v57 = vsel %vm488_vm5, %v2674_v51, %v2675_v50 }
  0x86   :  { %v384_v58 = vpack.c.bf16 %v376_v54, %v376_v54  ;;  %v383_v59 = vpack.c.bf16 %v375_v55, %v375_v55  ;;  %2386 = vmatprep.subr.msk.bf16.mxu1 %vm106_vm0, %v67_v45  ;;  %v498_v60 = vpack.c.bf16 %v490_v56, %v490_v56  ;;  %v497_v61 = vpack.c.bf16 %v489_v57, %v489_v57 }
  0x88   :  { %2380 = vmatmul.mubr.msk.bf16.vlgmr.msra.gmra.mrb[0].mxu1 %vm96_vm1, %v2840_v53  ;;  %2410 = vmatprep.subr.msk.bf16.mxu0 %vm106_vm0, %v384_v58  ;;  %v408_v63 = vsel %vm106_vm0, %v383_v59, 0  ;;  %v522_v2 = vsel %vm106_vm0, %v497_v61, 0 }
  0x89   :  { %414 = vmatpush1.bf16.msra.mxu0 %v408_v63  ;;  %155 = vmatprep.mubr.bf16.mxu1 %v2897_v1 }
  0x8a   :  { %203 = vmatpush1.bf16.msra.mxu1 %v197_v62  ;;  %2422 = vmatprep.subr.msk.bf16.mxu0 %vm106_vm0, %v498_v60 }
  0x8b   :  { %2553 = vmatprep.subr.msk.bf16.mxu1 %vm106_vm0, %v2980_v13  ;;  %v2849_v13 = vld [vmem:[%s3660_s2 + $0x58] sm:$0xff]  }
  0x8c   :  { %2411 = vmatmul.mubr.msk.bf16.vlgmr.msra.gmra.mrb[0].mxu0 %vm96_vm1, %v2841_v0 }
  0x8d   :  { %455 = vmatprep.mubr.bf16.mxu0 %v2897_v1  ;;  %528 = vmatpush1.bf16.msra.mxu0 %v522_v2 }
  0x90   :  { %2381 = vmatmul.mubr.msk.bf16.gmra.mrb[4].mxu1 %vm96_vm1, %v2842_v3 }
  0x91   :  { %165 = vmatprep.mubr.bf16.mxu1 %v2897_v1 }
  0x93   :  { %v606_v56 = vpop.permute.xlu1 %605  ;;  %v626_v61 = vpop.permute.xlu0 %625 }
  0x94   :  { %2412 = vmatmul.mubr.msk.bf16.gmra.mrb[4].mxu0 %vm96_vm1, %v2843_v4 }
  0x95   :  { %465 = vmatprep.mubr.bf16.mxu0 %v2897_v1 }
  0x97   :  { %v611_v2 = vpop.permute.xlu1 %610 }
  0x98   :  { %2382 = vmatmul.mubr.msk.bf16.gmra.mrb[8].mxu1 %vm96_vm1, %v2844_v6 }
  0x99   :  { %234 = vmatprep.mubr.bf16.mxu1 %v2897_v1 }
  0x9c   :  { %2413 = vmatmul.mubr.msk.bf16.gmra.mrb[8].mxu0 %vm96_vm1, %v2845_v7 }
  0x9d   :  { %559 = vmatprep.mubr.bf16.mxu0 %v2897_v1 }
  0xa0   :  { %2387 = vmatmul.mubr.msk.bf16.vlgmr.msra.gmra.mrb[0].mxu1 %vm96_vm1, %v2846_v10 }
  0xa1   :  { %244 = vmatprep.mubr.bf16.mxu1 %v2897_v1  ;;  %2554 = vmatpush1.bf16.msra.mxu1 %v2987_v15  ;;  %v2852_v15 = vld [vmem:[%s3660_s2 + $0x60] ss:$0 sps:$4 sm:$0xff]  }
  0xa4   :  { %2423 = vmatmul.mubr.msk.bf16.vlgmr.msra.gmra.mrb[0].mxu0 %vm96_vm1, %v2847_v11 }
  0xa5   :  { %569 = vmatprep.mubr.bf16.mxu0 %v2897_v1 }
  0xa8   :  { %2388 = vmatmul.mubr.msk.bf16.gmra.mrb[4].mxu1 %vm96_vm1, %v2848_v12  ;;  %v616_v12 = vpop.permute.xlu0 %615 }
  0xa9   :  { %254 = vmatprep.mubr.bf16.mxu1 %v2897_v1 }
  0xac   :  { %2424 = vmatmul.mubr.msk.bf16.gmra.mrb[4].mxu0 %vm96_vm1, %v2849_v13 }
  0xad   :  { %579 = vmatprep.mubr.bf16.mxu0 %v2897_v1 }
  0xb0   :  { %2389 = vmatmul.mubr.msk.bf16.gmra.mrb[12].mxu1 %vm96_vm1, %v2850_v14 }
  0xb1   :  { %351 = vmatprep.mubr.bf16.mxu1 %v2897_v1 }
  0xb4   :  { %2425 = vmatmul.mubr.msk.bf16.gmra.mrb[12].mxu0 %vm96_vm1, %v2852_v15 }
  0xb5   :  { %1666 = vmatprep.mubr.bf16.mxu0 %v2897_v1 }
  0xb8   :  { %2401 = vmatmul.mubr.msk.bf16.vlgmr.msra.gmra.mrb[16].mxu1 %vm96_vm1, %v2851_v16 }
  0xb9   :  { %897 = vmatprep.mubr.bf16.mxu1 %v2897_v1 }
 0x16b   :  { %v167_v17 = vpop.f32.mrb[8].mxu1 }
 0x16c   :  { %v169_v18 = vpop.f32.mrb[9].mxu1 }
 0x16d   :  { %v171_v19 = vpop.f32.mrb[10].mxu1 }
 0x16e   :  { %v172_v20 = vpop.f32.mrb[11].mxu1 }
 0x16f   :  { %v467_v21 = vpop.f32.mrb[8].mxu0 }
 0x170   :  { %v469_v22 = vpop.f32.mrb[9].mxu0 }
 0x171   :  { %v471_v23 = vpop.f32.mrb[10].mxu0 }
 0x172   :  { %v472_v24 = vpop.f32.mrb[11].mxu0 }
 0x173   :  { %v236_v25 = vpop.f32.mrb[0].mxu1 }
 0x174   :  { %v238_v26 = vpop.f32.mrb[1].mxu1 }
 0x175   :  { %v240_v27 = vpop.f32.mrb[2].mxu1 }
 0x176   :  { %v242_v28 = vpop.f32.mrb[3].mxu1 }
 0x177   :  { %v561_v29 = vpop.f32.mrb[0].mxu0 }
 0x178   :  { %v2555_v30 = vadd.f32 %v561_v29, %v236_v25  ;;  %v563_v32 = vpop.f32.mrb[1].mxu0 }
 0x179   :  { %v2556_v33 = vadd.f32 %v563_v32, %v238_v26  ;;  %v565_v34 = vpop.f32.mrb[2].mxu0 }
 0x17a   :  { %v2557_v35 = vadd.f32 %v565_v34, %v240_v27  ;;  %v567_v36 = vpop.f32.mrb[3].mxu0  ;;  %v628_v15 = vadd.f32 %v2555_v30, %v606_v56 }
 0x17b   :  { %v2558_v37 = vadd.f32 %v567_v36, %v242_v28  ;;  %v246_v38 = vpop.f32.mrb[4].mxu1  ;;  %v629_v16 = vadd.f32 %v2556_v33, %v606_v56 }
 0x17c   :  { %v248_v39 = vpop.f32.mrb[5].mxu1  ;;  %v630_v19 = vadd.f32 %v2557_v35, %v611_v2 }
 0x17d   :  { %v250_v40 = vpop.f32.mrb[6].mxu1  ;;  %v631_v25 = vadd.f32 %v2558_v37, %v611_v2 }
 0x17e   :  { %v252_v41 = vpop.f32.mrb[7].mxu1 }
 0x17f   :  { %v571_v42 = vpop.f32.mrb[4].mxu0 }
 0x180   :  { %v2559_v43 = vadd.f32 %v571_v42, %v246_v38  ;;  %v573_v44 = vpop.f32.mrb[5].mxu0 }
 0x181   :  { %v2560_v45 = vadd.f32 %v573_v44, %v248_v39  ;;  %v575_v46 = vpop.f32.mrb[6].mxu0 }
 0x182   :  { %v2561_v47 = vadd.f32 %v575_v46, %v250_v40  ;;  %v577_v48 = vpop.f32.mrb[7].mxu0  ;;  %v632_v20 = vadd.f32 %v2559_v43, %v616_v12 }
 0x183   :  { %v2562_v49 = vadd.f32 %v577_v48, %v252_v41  ;;  %v256_v50 = vpop.f32.mrb[12].mxu1  ;;  %v633_v26 = vadd.f32 %v2560_v45, %v616_v12 }
 0x184   :  { %v257_v51 = vadd.f32 %v256_v50, %v167_v17  ;;  %v258_v52 = vpop.f32.mrb[13].mxu1  ;;  %v621_v17 = vpop.permute.xlu1 %620 }
 0x185   :  { %v259_v53 = vadd.f32 %v258_v52, %v169_v18  ;;  %v260_v54 = vpop.f32.mrb[14].mxu1  ;;  %v634_v23 = vadd.f32 %v2561_v47, %v621_v17  ;;  %v635_v27 = vadd.f32 %v2562_v49, %v621_v17 }
 0x186   :  { %v261_v55 = vpop.f32.mrb[15].mxu1 }
 0x187   :  { %v581_v57 = vpop.f32.mrb[12].mxu0 }
 0x188   :  { %v583_v58 = vpop.f32.mrb[13].mxu0 }
 0x189   :  { %v585_v59 = vpop.f32.mrb[14].mxu0 }
 0x18a   :  { %v586_v60 = vpop.f32.mrb[15].mxu0 }
 0x18b   :  { %v353_v62 = vpop.f32.mrb[16].mxu1 }
 0x18c   :  { %v368_v63 = vadd.f32 %v353_v62, %v257_v51  ;;  %v355_v0 = vpop.f32.mrb[17].mxu1  ;;  %v707_v62 = vpop.permute.xlu1 %706 }
 0x18d   :  { %v369_v3 = vadd.f32 %v355_v0, %v259_v53  ;;  %v357_v4 = vpop.f32.mrb[18].mxu1 }
 0x18e   :  { %v482_v6 = vadd.f32 %v467_v21, %v368_v63  ;;  %v358_v7 = vpop.f32.mrb[19].mxu1  ;;  %v702_v63 = vpop.permute.xlu0 %701 }
 0x18f   :  { %v483_v10 = vadd.f32 %v469_v22, %v369_v3 }
 0x190   :  { %v596_v11 = vadd.f32 %v581_v57, %v482_v6  ;;  %v739_v6 = vpop.permute.xlu1 %738 }
 0x191   :  { %v597_v13 = vadd.f32 %v583_v58, %v483_v10 }
 0x192   :  { %v636_v14 = vadd.f32 %v626_v61, %v596_v11  ;;  %v734_v7 = vpop.permute.xlu0 %733 }
 0x193   :  { %v637_v18 = vadd.f32 %v626_v61, %v597_v13 }
 0x194   :  { %v641_v24 = vrot.slane %v636_v14, %v2968_v5  ;;  %v717_v10 = vpop.permute.xlu1 %716 }
 0x195   :  { %v645_v21 = vrot.slane %v637_v18, %v2968_v5 }
 0x196   :  { %v646_v28 = vsub.f32 %v628_v15, %v641_v24  ;;  %v648_v22 = vsub.f32 %v630_v19, %v641_v24  ;;  %v652_v29 = vsub.f32 %v634_v23, %v641_v24  ;;  %v650_v32 = vsub.f32 %v632_v20, %v641_v24  ;;  %v712_v11 = vpop.permute.xlu0 %711 }
 0x197   :  { %v647_v34 = vsub.f32 %v629_v16, %v645_v21  ;;  %v649_v36 = vsub.f32 %v631_v25, %v645_v21  ;;  %v653_v30 = vsub.f32 %v635_v27, %v645_v21  ;;  %v651_v33 = vsub.f32 %v633_v26, %v645_v21 }
 0x198   :  { %v654_v38 = vmul.f32 %v646_v28, %v646_v28  ;;  %v656_v39 = vmul.f32 %v648_v22, %v648_v22  ;;  %v658_v41 = vmul.f32 %v650_v32, %v650_v32  ;;  %v660_v44 = vmul.f32 %v652_v29, %v652_v29 }
 0x199   :  { %v655_v35 = vmul.f32 %v647_v34, %v647_v34  ;;  %v657_v40 = vmul.f32 %v649_v36, %v649_v36  ;;  %v659_v43 = vmul.f32 %v651_v33, %v651_v33  ;;  %v661_v46 = vmul.f32 %v653_v30, %v653_v30 }
 0x19a   :  { %v662_v42 = vadd.f32 %v656_v39, %v654_v38  ;;  %v749_v38 = vpop.permute.xlu1 %748 }
 0x19b   :  { %v671_v37 = vadd.f32 %v657_v40, %v655_v35  ;;  %v744_v35 = vpop.permute.xlu0 %743 }
 0x19c   :  { %v663_v45 = vadd.f32 %v662_v42, %v658_v41 }
 0x19d   :  { %v672_v47 = vadd.f32 %v671_v37, %v659_v43 }
 0x19e   :  { %v664_v48 = vadd.f32 %v663_v45, %v660_v44 }
 0x19f   :  { %v673_v49 = vadd.f32 %v672_v47, %v661_v46 }
 0x1a0   :  { %v665_v50 = vrot.slane %v664_v48, 4 }
 0x1a1   :  { %v674_v51 = vrot.slane %v673_v49, 4 }
 0x1a2   :  { %v666_v52 = vadd.f32 %v665_v50, %v664_v48 }
 0x1a3   :  { %v675_v53 = vadd.f32 %v674_v51, %v673_v49 }
 0x1a4   :  { %v667_v54 = vrot.slane %v666_v52, 2 }
 0x1a5   :  { %v676_v55 = vrot.slane %v675_v53, 2 }
 0x1a6   :  { %v668_v56 = vadd.f32 %v667_v54, %v666_v52 }
 0x1a7   :  { %v677_v57 = vadd.f32 %v676_v55, %v675_v53 }
 0x1a8   :  { %v669_v58 = vrot.slane %v668_v56, 1 }
 0x1a9   :  { %v678_v59 = vrot.slane %v677_v57, 1 }
 0x1aa   :  { %v670_v60 = vadd.f32 %v669_v58, %v668_v56 }
 0x1ab   :  { %v679_v61 = vadd.f32 %v678_v59, %v677_v57 }
 0x1ac   :  { %v681_v0 = vmul.f32 0.03125, %v670_v60 }
 0x1ad   :  { %v682_v2 = vmul.f32 0.03125, %v679_v61 }
 0x1ae   :  { %v683_v3 = vadd.f32 0.0001, %v681_v0 }
 0x1af   :  { %v684_v4 = vadd.f32 0.0001, %v682_v2  ;;  %v1370_v2 = vld [vmem:[%s3665_s5 + $0x20] sm:$0xff] }
 0x1b0   :  { %2883 = vrsqrt.f32 %v683_v3  ;;  %v1366_v3 = vld [vmem:[%s3665_s5] sm:$0xff] }
 0x1b1   :  { %2885 = vrsqrt.f32 %v684_v4  ;;  %v1367_v4 = vld [vmem:[%s3665_s5 + $0x8] sm:$0xff] }
 0x1ba   :  { %v2884_v12 = vpop.eup %2883 }
 0x1bb   :  { %v2886_v13 = vpop.eup %2885  ;;  %v691_v14 = vmul.f32 %v2884_v12, %v650_v32  ;;  %v693_v15 = vmul.f32 %v2884_v12, %v652_v29  ;;  %v687_v16 = vmul.f32 %v2884_v12, %v646_v28  ;;  %v689_v17 = vmul.f32 %v2884_v12, %v648_v22  ;;  %v2480_v12 = vld [vmem:[%s3663_s7 + $0x20] sm:$0xff] }
 0x1bc   :  { %v692_v18 = vmul.f32 %v2886_v13, %v651_v33  ;;  %v694_v19 = vmul.f32 %v2886_v13, %v653_v30  ;;  %v688_v20 = vmul.f32 %v2886_v13, %v647_v34  ;;  %v690_v23 = vmul.f32 %v2886_v13, %v649_v36  ;;  %v2481_v13 = vld [vmem:[%s3663_s7 + $0x28] sm:$0xff] }
 0x1bd   :  { %v723_v24 = vmul.f32 %v712_v11, %v691_v14  ;;  %v725_v25 = vmul.f32 %v717_v10, %v693_v15  ;;  %v719_v26 = vmul.f32 %v702_v63, %v687_v16  ;;  %v721_v27 = vmul.f32 %v707_v62, %v689_v17  ;;  %v2478_v14 = vld [vmem:[%s3662_s6 + $0x30] sm:$0xff]  ;;  %v2479_v15 = vld [vmem:[%s3662_s6 + $0x38] sm:$0xff] }
 0x1be   :  { %v724_v21 = vmul.f32 %v712_v11, %v692_v18  ;;  %v726_v39 = vmul.f32 %v717_v10, %v694_v19  ;;  %v720_v40 = vmul.f32 %v702_v63, %v688_v20  ;;  %v722_v41 = vmul.f32 %v707_v62, %v690_v23  ;;  %v2476_v10 = vld [vmem:[%s3662_s6 + $0x20] sm:$0xff]  ;;  %v2477_v11 = vld [vmem:[%s3662_s6 + $0x28] sm:$0xff]  ;;  %v2482_v16 = vld [vmem:[%s3663_s7 + $0x30] sm:$0xff] }
 0x1bf   :  { %v757_v42 = vadd.f32 %v749_v38, %v725_v25  ;;  %v755_v43 = vadd.f32 %v744_v35, %v723_v24  ;;  %v751_v32 = vadd.f32 %v734_v7, %v719_v26  ;;  %v753_v29 = vadd.f32 %v739_v6, %v721_v27  ;;  %v2483_v17 = vld [vmem:[%s3663_s7 + $0x38] sm:$0xff] }
 0x1c0   :  { %v758_v28 = vadd.f32 %v749_v38, %v726_v39  ;;  %v756_v22 = vadd.f32 %v744_v35, %v724_v21  ;;  %v752_v33 = vadd.f32 %v734_v7, %v720_v40  ;;  %v754_v30 = vadd.f32 %v739_v6, %v722_v41  ;;  %v1368_v6 = vld [vmem:[%s3665_s5 + $0x10] sm:$0xff]  ;;  %v1369_v7 = vld [vmem:[%s3665_s5 + $0x18] sm:$0xff] }
 0x1c1   :  { %v765_v34 = vmax.f32 %v757_v42, 0.0  ;;  %v763_v36 = vmax.f32 %v755_v43, 0.0  ;;  %v759_v37 = vmax.f32 %v751_v32, 0.0  ;;  %v761_v44 = vmax.f32 %v753_v29, 0.0 }
 0x1c2   :  { %v766_v45 = vmax.f32 %v758_v28, 0.0  ;;  %v764_v46 = vmax.f32 %v756_v22, 0.0  ;;  %v760_v47 = vmax.f32 %v752_v33, 0.0  ;;  %v762_v48 = vmax.f32 %v754_v30, 0.0 }
 0x1c3   :  { %v3143_v49 = vmul.f32 %v765_v34, %v2974_v8  ;;  %v3146_v50 = vmul.f32 %v763_v36, %v2974_v8  ;;  %v3149_v51 = vmul.f32 %v759_v37, %v2974_v8  ;;  %v3152_v52 = vmul.f32 %v761_v44, %v2974_v8 }
 0x1c4   :  { %v3155_v53 = vmul.f32 %v766_v45, %v2976_v9  ;;  %v3158_v54 = vmul.f32 %v764_v46, %v2976_v9  ;;  %v3161_v55 = vmul.f32 %v760_v47, %v2976_v9  ;;  %v3164_v56 = vmul.f32 %v762_v48, %v2976_v9 }
 0x1c5   :  { %v2678_v57 = vpack.i.bf16 %v3152_v52, %v3149_v51  ;;  %v2683_v58 = vpack.i.bf16 %v3143_v49, %v3146_v50  ;;  %v1015_v62 = vpack.c.bf16 %v3152_v52, %v3149_v51  ;;  %v1017_v0 = vpack.c.bf16 %v3143_v49, %v3146_v50 }
 0x1c6   :  { %v2688_v59 = vpack.i.bf16 %v3164_v56, %v3161_v55  ;;  %v2693_v60 = vpack.i.bf16 %v3155_v53, %v3158_v54  ;;  %v1016_v61 = vpack.c.bf16 %v3164_v56, %v3161_v55  ;;  %v1018_v63 = vpack.c.bf16 %v3155_v53, %v3158_v54  ;;  %v2858_v53 = vld [vmem:[%s3664_s4 + $0x10] ss:$0 sps:$4 sm:$0xff]  }
 0x1c7   :  { %2679 = vrot.lane.b32.xlu0 %v2678_v57, %s2898_s1 }
 0x1c8   :  { %2689 = vrot.lane.b32.xlu1 %v2688_v59, %s2898_s1 }
 0x1cb   :  { %2684 = vrot.lane.b32.xlu0 %v2683_v58, %s2898_s1 }
 0x1cc   :  { %2694 = vrot.lane.b32.xlu1 %v2693_v60, %s2898_s1 }
 0x1cf   :  { %2699 = vrot.lane.b32.xlu0 %v2678_v57, %s2899_s19 }
 0x1d0   :  { %2709 = vrot.lane.b32.xlu1 %v2688_v59, %s2899_s19 }
 0x1d3   :  { %2704 = vrot.lane.b32.xlu0 %v2683_v58, %s2899_s19 }
 0x1d4   :  { %2714 = vrot.lane.b32.xlu1 %v2693_v60, %s2899_s19 }
 0x1d7   :  { %2719 = vrot.lane.b32.xlu0 %v2678_v57, %s2900_s22 }
 0x1d8   :  { %2729 = vrot.lane.b32.xlu1 %v2688_v59, %s2900_s22 }
 0x1db   :  { %2724 = vrot.lane.b32.xlu0 %v2683_v58, %s2900_s22 }
 0x1dc   :  { %2734 = vrot.lane.b32.xlu1 %v2693_v60, %s2900_s22 }
 0x1df   :  { %2739 = vrot.lane.b32.xlu0 %v2678_v57, %s2901_s23  ;;  %v2853_v57 = vld [vmem:[%s3664_s4 + $0x14] sm:$0xff]  }
 0x1e0   :  { %2749 = vrot.lane.b32.xlu1 %v2688_v59, %s2901_s23 }
 0x1e3   :  { %2744 = vrot.lane.b32.xlu0 %v2683_v58, %s2901_s23 }
 0x1e4   :  { %2754 = vrot.lane.b32.xlu1 %v2693_v60, %s2901_s23 }
 0x1e7   :  { %1393 = vperm.xlu0 %2676, %v1370_v2  }
 0x1e8   :  { %1373 = vperm.xlu1 %2677, %v1366_v3  }
 0x1eb   :  { %1378 = vperm.xlu0 %2676, %v1367_v4  }
 0x1ec   :  { %1383 = vperm.xlu1 %2677, %v1368_v6  }
 0x1ef   :  { %1388 = vperm.xlu0 %2676, %v1369_v7  }
 0x1f0   :  { %1469 = vperm.xlu1 %2677, %v2476_v10  }
 0x1f3   :  { %1474 = vperm.xlu0 %2676, %v2477_v11  }
 0x1f4   :  { %1502 = vperm.xlu1 %2677, %v2480_v12  }
 0x1f7   :  { %1507 = vperm.xlu0 %2676, %v2481_v13  }
 0x1f8   :  { %1479 = vperm.xlu1 %2677, %v2478_v14  }
 0x1fb   :  { %1484 = vperm.xlu0 %2676, %v2479_v15  }
 0x1fc   :  { %1512 = vperm.xlu1 %2677, %v2482_v16  }
 0x1ff   :  { %1517 = vperm.xlu0 %2676, %v2483_v17  }
 0x239   :  { %v2680_v18 = vpop.permute.xlu0 %2679 }
 0x23a   :  { %v2682_v19 = vunpack.i.h.bf16 %v2680_v18  ;;  %v2681_v20 = vunpack.i.l.bf16 %v2680_v18  ;;  %v2690_v23 = vpop.permute.xlu1 %2689 }
 0x23b   :  { %v2692_v24 = vunpack.i.h.bf16 %v2690_v23  ;;  %v2691_v25 = vunpack.i.l.bf16 %v2690_v23  ;;  %v2855_v23 = vld [vmem:[%s3664_s4 + $0x24] ss:$0 sps:$4 sm:$0xff]  }
 0x23d   :  { %v829_v26 = vsel %vm72_vm3, %v2692_v24, %v2682_v19  ;;  %v828_v27 = vsel %vm72_vm3, %v2691_v25, %v2681_v20  ;;  %v2685_v21 = vpop.permute.xlu0 %2684  ;;  %v824_v38 = vsel %vm72_vm3, %v2681_v20, %v2691_v25  ;;  %v825_v39 = vsel %vm72_vm3, %v2682_v19, %v2692_v24  ;;  %v2854_v20 = vld [vmem:[%s3664_s4 + $0x1c] sm:$0xff]  }
 0x23e   :  { %v838_v35 = vpack.c.bf16 %v829_v26, %v828_v27  ;;  %v2687_v40 = vunpack.i.h.bf16 %v2685_v21  ;;  %v2686_v41 = vunpack.i.l.bf16 %v2685_v21  ;;  %v2695_v42 = vpop.permute.xlu1 %2694  ;;  %v839_v43 = vpack.c.bf16 %v825_v39, %v824_v38  ;;  %v2856_v26 = vld [vmem:[%s3664_s4] sm:$0xff]  }
 0x23f   :  { %v2697_v32 = vunpack.i.h.bf16 %v2695_v42  ;;  %v2696_v29 = vunpack.i.l.bf16 %v2695_v42  ;;  %v2859_v42 = vld [vmem:[%s3664_s4 + $0x28] sm:$0xff]  }
 0x240   :  { %865 = vmatprep.subr.bf16.mxu1 %v839_v43 }
 0x241   :  { %v831_v28 = vsel %vm72_vm3, %v2697_v32, %v2687_v40  ;;  %v830_v22 = vsel %vm72_vm3, %v2696_v29, %v2686_v41  ;;  %v2700_v33 = vpop.permute.xlu0 %2699  ;;  %866 = vmatpush1.bf16.msra.mxu1 %v838_v35  ;;  %v826_v30 = vsel %vm72_vm3, %v2686_v41, %v2696_v29  ;;  %v827_v34 = vsel %vm72_vm3, %v2687_v40, %v2697_v32  ;;  %v2857_v35 = vld [vmem:[%s3664_s4 + $0x8] sm:$0xff]  }
 0x242   :  { %v840_v36 = vpack.c.bf16 %v831_v28, %v830_v22  ;;  %v2702_v37 = vunpack.i.h.bf16 %v2700_v33  ;;  %v2701_v44 = vunpack.i.l.bf16 %v2700_v33  ;;  %v2710_v45 = vpop.permute.xlu1 %2709  ;;  %v841_v46 = vpack.c.bf16 %v827_v34, %v826_v30 }
 0x243   :  { %v2712_v47 = vunpack.i.h.bf16 %v2710_v45  ;;  %v2711_v48 = vunpack.i.l.bf16 %v2710_v45 }
 0x244   :  { %867 = vmatprep.subr.bf16.mxu1 %v841_v46 }
 0x245   :  { %v796_v58 = vsel %vm58_vm2, %v2712_v47, %v2702_v37  ;;  %v795_v59 = vsel %vm58_vm2, %v2711_v48, %v2701_v44  ;;  %v2705_v60 = vpop.permute.xlu0 %2704  ;;  %868 = vmatpush1.bf16.msra.mxu1 %v840_v36  ;;  %v791_v2 = vsel %vm58_vm2, %v2701_v44, %v2711_v48  ;;  %v792_v3 = vsel %vm58_vm2, %v2702_v37, %v2712_v47  ;;  %v2860_v48 = vld [vmem:[%s3664_s4 + $0x30] sm:$0xff]  }
 0x246   :  { %v804_v4 = vpack.c.bf16 %v796_v58, %v795_v59  ;;  %v2707_v6 = vunpack.i.h.bf16 %v2705_v60  ;;  %v2706_v7 = vunpack.i.l.bf16 %v2705_v60  ;;  %v2715_v10 = vpop.permute.xlu1 %2714  ;;  %v805_v11 = vpack.c.bf16 %v792_v3, %v791_v2 }
 0x247   :  { %v2717_v12 = vunpack.i.h.bf16 %v2715_v10  ;;  %v2716_v13 = vunpack.i.l.bf16 %v2715_v10  ;;  %v2862_v10 = vld [vmem:[%s3664_s4 + $0x3c] sm:$0xff]  }
 0x248   :  { %2434 = vmatmul.mubr.msk.bf16.vlgmr.msra.gmra.mrb[20].mxu1 %vm855_vm6, %v2853_v57  ;;  %948 = vmatprep.subr.bf16.mxu1 %v805_v11  ;;  %v2861_v57 = vld [vmem:[%s3664_s4 + $0x38] ss:$0 sps:$4 sm:$0xff]  }
 0x249   :  { %v798_v14 = vsel %vm58_vm2, %v2717_v12, %v2707_v6  ;;  %v797_v15 = vsel %vm58_vm2, %v2716_v13, %v2706_v7  ;;  %949 = vmatpush1.bf16.msra.mxu1 %v804_v4  ;;  %v793_v16 = vsel %vm58_vm2, %v2706_v7, %v2716_v13  ;;  %v794_v17 = vsel %vm58_vm2, %v2707_v6, %v2717_v12  ;;  %v2720_v24 = vpop.permute.xlu0 %2719 }
 0x24a   :  { %v806_v18 = vpack.c.bf16 %v798_v14, %v797_v15  ;;  %v807_v19 = vpack.c.bf16 %v794_v17, %v793_v16  ;;  %907 = vmatprep.mubr.bf16.mxu1 %v2897_v1  ;;  %v2730_v25 = vpop.permute.xlu1 %2729  ;;  %v2722_v55 = vunpack.i.h.bf16 %v2720_v24  ;;  %v2721_v56 = vunpack.i.l.bf16 %v2720_v24  ;;  %v2867_v24 = vld [vmem:[%s3664_s4 + $0x60] ss:$0 sps:$4 sm:$0xff]  }
 0x24b   :  { %v2731_v27 = vunpack.i.l.bf16 %v2730_v25 }
 0x24c   :  { %950 = vmatprep.subr.bf16.mxu1 %v807_v19  ;;  %v2864_v19 = vld [vmem:[%s3664_s4 + $0x4c] ss:$0 sps:$4 sm:$0xff]  }
 0x24d   :  { %951 = vmatpush1.bf16.msra.mxu1 %v806_v18  ;;  %v1132_v21 = vsel %vm374_vm4, %v2731_v27, %v2721_v56  ;;  %v2725_v51 = vpop.permute.xlu0 %2724  ;;  %v1128_v41 = vsel %vm374_vm4, %v2721_v56, %v2731_v27  ;;  %v2863_v18 = vld [vmem:[%s3664_s4 + $0x44] sm:$0xff]  }
 0x24e   :  { %1041 = vmatprep.subr.bf16.mxu1 %v1016_v61  ;;  %v2732_v61 = vunpack.i.h.bf16 %v2730_v25  ;;  %v2735_v52 = vpop.permute.xlu1 %2734  ;;  %v2727_v54 = vunpack.i.h.bf16 %v2725_v51 }
 0x24f   :  { %v2736_v40 = vunpack.i.l.bf16 %v2735_v52 }
 0x250   :  { %2435 = vmatmul.mubr.msk.bf16.gmra.mrb[24].mxu1 %vm855_vm6, %v2854_v20  ;;  %v1133_v38 = vsel %vm374_vm4, %v2732_v61, %v2722_v55  ;;  %v2865_v20 = vld [vmem:[%s3664_s4 + $0x50] sm:$0xff]  }
 0x251   :  { %917 = vmatprep.mubr.bf16.mxu1 %v2897_v1  ;;  %v1143_v39 = vpack.c.bf16 %v1133_v38, %v1132_v21  ;;  %v2740_v49 = vpop.permute.xlu0 %2739 }
 0x252   :  { %v2750_v50 = vpop.permute.xlu1 %2749  ;;  %v2742_v29 = vunpack.i.h.bf16 %v2740_v49  ;;  %v2741_v28 = vunpack.i.l.bf16 %v2740_v49 }
 0x253   :  { %v2752_v22 = vunpack.i.h.bf16 %v2750_v50  ;;  %v2751_v33 = vunpack.i.l.bf16 %v2750_v50 }
 0x255   :  { %v1259_v44 = vsel %vm488_vm5, %v2751_v33, %v2741_v28  ;;  %v1260_v45 = vsel %vm488_vm5, %v2752_v22, %v2742_v29  ;;  %v2745_v58 = vpop.permute.xlu0 %2744  ;;  %v1256_v6 = vsel %vm488_vm5, %v2742_v29, %v2752_v22  ;;  %v1255_v7 = vsel %vm488_vm5, %v2741_v28, %v2751_v33 }
 0x256   :  { %v1270_v47 = vpack.c.bf16 %v1260_v45, %v1259_v44  ;;  %v2755_v59 = vpop.permute.xlu1 %2754  ;;  %v2747_v60 = vunpack.i.h.bf16 %v2745_v58  ;;  %v2746_v2 = vunpack.i.l.bf16 %v2745_v58  ;;  %v1269_v13 = vpack.c.bf16 %v1256_v6, %v1255_v7 }
 0x257   :  { %v2757_v3 = vunpack.i.h.bf16 %v2755_v59  ;;  %v2756_v4 = vunpack.i.l.bf16 %v2755_v59 }
 0x258   :  { %2436 = vmatmul.mubr.msk.bf16.gmra.mrb[28].mxu1 %vm855_vm6, %v2855_v23  ;;  %v2866_v23 = vld [vmem:[%s3664_s4 + $0x58] sm:$0xff]  }
 0x259   :  { %980 = vmatprep.mubr.bf16.mxu1 %v2897_v1  ;;  %v1261_v11 = vsel %vm488_vm5, %v2756_v4, %v2746_v2  ;;  %v1262_v12 = vsel %vm488_vm5, %v2757_v3, %v2747_v60  ;;  %v1258_v14 = vsel %vm488_vm5, %v2747_v60, %v2757_v3  ;;  %v1257_v15 = vsel %vm488_vm5, %v2746_v2, %v2756_v4 }
 0x25a   :  { %v1272_v16 = vpack.c.bf16 %v1262_v12, %v1261_v11  ;;  %v1271_v17 = vpack.c.bf16 %v1258_v14, %v1257_v15 }
 0x260   :  { %2440 = vmatmul.mubr.msk.bf16.vlgmr.msra.gmra.mrb[20].mxu1 %vm855_vm6, %v2856_v26 }
 0x261   :  { %1042 = vmatpush1.bf16.msra.mxu1 %v1015_v62  ;;  %990 = vmatprep.mubr.bf16.mxu1 %v2897_v1  ;;  %v2726_v62 = vunpack.i.l.bf16 %v2725_v51 }
 0x262   :  { %1043 = vmatprep.subr.bf16.mxu1 %v1018_v63  ;;  %v2737_v63 = vunpack.i.h.bf16 %v2735_v52 }
 0x263   :  { %v1134_v43 = vsel %vm374_vm4, %v2736_v40, %v2726_v62  ;;  %v1130_v36 = vsel %vm374_vm4, %v2726_v62, %v2736_v40 }
 0x264   :  { %v1135_v32 = vsel %vm374_vm4, %v2737_v63, %v2727_v54  ;;  %v1131_v34 = vsel %vm374_vm4, %v2727_v54, %v2737_v63 }
 0x265   :  { %1044 = vmatpush1.bf16.msra.mxu1 %v1017_v0  ;;  %v1129_v0 = vsel %vm374_vm4, %v2722_v55, %v2732_v61  ;;  %v1145_v37 = vpack.c.bf16 %v1135_v32, %v1134_v43  ;;  %v1144_v46 = vpack.c.bf16 %v1131_v34, %v1130_v36 }
 0x266   :  { %1168 = vmatprep.subr.bf16.mxu1 %v1143_v39  ;;  %v1142_v30 = vpack.c.bf16 %v1129_v0, %v1128_v41  ;;  %v1394_v22 = vpop.permute.xlu0 %1393 }
 0x268   :  { %2441 = vmatmul.mubr.msk.bf16.gmra.mrb[24].mxu1 %vm855_vm6, %v2857_v35 }
 0x269   :  { %1000 = vmatprep.mubr.bf16.mxu1 %v2897_v1 }
 0x26a   :  { %v1379_v44 = vpop.permute.xlu0 %1378 }
 0x26e   :  { %v1389_v2 = vpop.permute.xlu0 %1388 }
 0x270   :  { %2442 = vmatmul.mubr.msk.bf16.gmra.mrb[32].mxu1 %vm855_vm6, %v2858_v53 }
 0x271   :  { %1073 = vmatprep.mubr.bf16.mxu1 %v2897_v1 }
 0x278   :  { %2451 = vmatmul.mubr.msk.bf16.vlgmr.msra.gmra.mrb[20].mxu1 %vm855_vm6, %v2859_v42 }
 0x279   :  { %1169 = vmatpush1.bf16.msra.mxu1 %v1142_v30  ;;  %1083 = vmatprep.mubr.bf16.mxu1 %v2897_v1 }
 0x27a   :  { %1170 = vmatprep.subr.bf16.mxu1 %v1145_v37  ;;  %v1374_v37 = vpop.permute.xlu1 %1373 }
 0x27d   :  { %1171 = vmatpush1.bf16.msra.mxu1 %v1144_v46 }
 0x27e   :  { %1295 = vmatprep.subr.bf16.mxu1 %v1270_v47  ;;  %v1384_v60 = vpop.permute.xlu1 %1383 }
 0x280   :  { %2452 = vmatmul.mubr.msk.bf16.gmra.mrb[24].mxu1 %vm855_vm6, %v2860_v48 }
 0x281   :  { %1093 = vmatprep.mubr.bf16.mxu1 %v2897_v1 }
 0x288   :  { %2453 = vmatmul.mubr.msk.bf16.gmra.mrb[36].mxu1 %vm855_vm6, %v2861_v57 }
 0x289   :  { %1200 = vmatprep.mubr.bf16.mxu1 %v2897_v1 }
 0x290   :  { %2462 = vmatmul.mubr.msk.bf16.vlgmr.msra.gmra.mrb[20].mxu1 %vm855_vm6, %v2862_v10 }
 0x291   :  { %1296 = vmatpush1.bf16.msra.mxu1 %v1269_v13  ;;  %1210 = vmatprep.mubr.bf16.mxu1 %v2897_v1 }
 0x292   :  { %1297 = vmatprep.subr.bf16.mxu1 %v1272_v16 }
 0x295   :  { %1298 = vmatpush1.bf16.msra.mxu1 %v1271_v17 }
 0x298   :  { %2463 = vmatmul.mubr.msk.bf16.gmra.mrb[24].mxu1 %vm855_vm6, %v2863_v18 }
 0x299   :  { %1220 = vmatprep.mubr.bf16.mxu1 %v2897_v1 }
 0x2a0   :  { %2464 = vmatmul.mubr.msk.bf16.gmra.mrb[40].mxu1 %vm855_vm6, %v2864_v19 }
 0x2a1   :  { %1327 = vmatprep.mubr.bf16.mxu1 %v2897_v1 }
 0x2a8   :  { %2473 = vmatmul.mubr.msk.bf16.vlgmr.msra.gmra.mrb[20].mxu1 %vm855_vm6, %v2865_v20 }
 0x2a9   :  { %1337 = vmatprep.mubr.bf16.mxu1 %v2897_v1 }
 0x2b0   :  { %2474 = vmatmul.mubr.msk.bf16.gmra.mrb[24].mxu1 %vm855_vm6, %v2866_v23 }
 0x2b1   :  { %1347 = vmatprep.mubr.bf16.mxu1 %v2897_v1 }
 0x2b8   :  { %2475 = vmatmul.mubr.msk.bf16.gmra.mrb[44].mxu1 %vm855_vm6, %v2867_v24 }
 0x2b9   :  { %2352 = vmatprep.mubr.bf16.mxu1 %v2897_v1 }
 0x32b   :  { %v919_v25 = vpop.f32.mrb[28].mxu1 }
 0x32c   :  { %v921_v26 = vpop.f32.mrb[29].mxu1 }
 0x32d   :  { %v923_v55 = vpop.f32.mrb[30].mxu1 }
 0x32e   :  { %v924_v56 = vpop.f32.mrb[31].mxu1 }
 0x343   :  { %v1002_v61 = vpop.f32.mrb[32].mxu1 }
 0x344   :  { %v1003_v27 = vadd.f32 %v1002_v61, %v919_v25  ;;  %v1004_v21 = vpop.f32.mrb[33].mxu1 }
 0x345   :  { %v1005_v38 = vadd.f32 %v1004_v21, %v921_v26  ;;  %v1006_v39 = vpop.f32.mrb[34].mxu1 }
 0x346   :  { %v1007_v35 = vpop.f32.mrb[35].mxu1 }
 0x35b   :  { %v1095_v51 = vpop.f32.mrb[36].mxu1 }
 0x35c   :  { %v1110_v52 = vadd.f32 %v1095_v51, %v1003_v27  ;;  %v1097_v53 = vpop.f32.mrb[37].mxu1 }
 0x35d   :  { %v1111_v54 = vadd.f32 %v1097_v53, %v1005_v38  ;;  %v1099_v62 = vpop.f32.mrb[38].mxu1 }
 0x35e   :  { %v1100_v63 = vpop.f32.mrb[39].mxu1 }
 0x373   :  { %v1222_v40 = vpop.f32.mrb[40].mxu1 }
 0x374   :  { %v1237_v49 = vadd.f32 %v1222_v40, %v1110_v52  ;;  %v1224_v50 = vpop.f32.mrb[41].mxu1 }
 0x375   :  { %v1238_v0 = vadd.f32 %v1224_v50, %v1111_v54  ;;  %v1226_v41 = vpop.f32.mrb[42].mxu1 }
 0x376   :  { %v1227_v42 = vpop.f32.mrb[43].mxu1 }
 0x37b   :  { %v1329_v43 = vpop.f32.mrb[20].mxu1 }
 0x37c   :  { %v1331_v32 = vpop.f32.mrb[21].mxu1  ;;  %v1396_v3 = vadd.f32 %v1374_v37, %v1329_v43 }
 0x37d   :  { %v1333_v29 = vpop.f32.mrb[22].mxu1  ;;  %v1397_v4 = vadd.f32 %v1374_v37, %v1331_v32 }
 0x37e   :  { %v1335_v28 = vpop.f32.mrb[23].mxu1  ;;  %v1398_v7 = vadd.f32 %v1379_v44, %v1333_v29 }
 0x37f   :  { %v1399_v13 = vadd.f32 %v1379_v44, %v1335_v28 }
 0x383   :  { %v1339_v33 = vpop.f32.mrb[24].mxu1 }
 0x384   :  { %v1341_v30 = vpop.f32.mrb[25].mxu1  ;;  %v1400_v10 = vadd.f32 %v1384_v60, %v1339_v33 }
 0x385   :  { %v1343_v34 = vpop.f32.mrb[26].mxu1  ;;  %v1401_v14 = vadd.f32 %v1384_v60, %v1341_v30  ;;  %v1470_v30 = vpop.permute.xlu1 %1469 }
 0x386   :  { %v1345_v36 = vpop.f32.mrb[27].mxu1  ;;  %v1402_v11 = vadd.f32 %v1389_v2, %v1343_v34  ;;  %v1475_v34 = vpop.permute.xlu0 %1474 }
 0x387   :  { %v1403_v15 = vadd.f32 %v1389_v2, %v1345_v36 }
 0x38b   :  { %v1349_v45 = vpop.f32.mrb[44].mxu1 }
 0x38c   :  { %v1364_v46 = vadd.f32 %v1349_v45, %v1237_v49  ;;  %v1351_v47 = vpop.f32.mrb[45].mxu1 }
 0x38d   :  { %v1365_v48 = vadd.f32 %v1351_v47, %v1238_v0  ;;  %v1353_v57 = vpop.f32.mrb[46].mxu1  ;;  %v1508_v47 = vpop.permute.xlu0 %1507 }
 0x38e   :  { %v1404_v58 = vadd.f32 %v1394_v22, %v1364_v46  ;;  %v1354_v59 = vpop.f32.mrb[47].mxu1  ;;  %v1503_v46 = vpop.permute.xlu1 %1502 }
 0x38f   :  { %v1405_v6 = vadd.f32 %v1394_v22, %v1365_v48 }
 0x390   :  { %v1409_v12 = vrot.slane %v1404_v58, %v2968_v5 }
 0x391   :  { %v1413_v16 = vrot.slane %v1405_v6, %v2968_v5  ;;  %v1485_v57 = vpop.permute.xlu0 %1484 }
 0x392   :  { %v1414_v17 = vsub.f32 %v1396_v3, %v1409_v12  ;;  %v1416_v18 = vsub.f32 %v1398_v7, %v1409_v12  ;;  %v1418_v19 = vsub.f32 %v1400_v10, %v1409_v12  ;;  %v1420_v20 = vsub.f32 %v1402_v11, %v1409_v12  ;;  %v1480_v48 = vpop.permute.xlu1 %1479 }
 0x393   :  { %v1415_v23 = vsub.f32 %v1397_v4, %v1413_v16  ;;  %v1417_v24 = vsub.f32 %v1399_v13, %v1413_v16  ;;  %v1419_v25 = vsub.f32 %v1401_v14, %v1413_v16  ;;  %v1421_v26 = vsub.f32 %v1403_v15, %v1413_v16 }
 0x394   :  { %v1422_v55 = vmul.f32 %v1414_v17, %v1414_v17  ;;  %v1424_v56 = vmul.f32 %v1416_v18, %v1416_v18  ;;  %v1426_v21 = vmul.f32 %v1418_v19, %v1418_v19  ;;  %v1428_v51 = vmul.f32 %v1420_v20, %v1420_v20 }
 0x395   :  { %v1423_v61 = vmul.f32 %v1415_v23, %v1415_v23  ;;  %v1425_v27 = vmul.f32 %v1417_v24, %v1417_v24  ;;  %v1427_v39 = vmul.f32 %v1419_v25, %v1419_v25  ;;  %v1429_v53 = vmul.f32 %v1421_v26, %v1421_v26 }
 0x396   :  { %v1430_v38 = vadd.f32 %v1424_v56, %v1422_v55  ;;  %v1513_v16 = vpop.permute.xlu1 %1512  ;;  %v1518_v55 = vpop.permute.xlu0 %1517 }
 0x397   :  { %v1439_v35 = vadd.f32 %v1425_v27, %v1423_v61 }
 0x398   :  { %v1431_v52 = vadd.f32 %v1430_v38, %v1426_v21 }
 0x399   :  { %v1440_v54 = vadd.f32 %v1439_v35, %v1427_v39 }
 0x39a   :  { %v1432_v62 = vadd.f32 %v1431_v52, %v1428_v51 }
 0x39b   :  { %v1441_v63 = vadd.f32 %v1440_v54, %v1429_v53 }
 0x39c   :  { %v1433_v40 = vrot.slane %v1432_v62, 4 }
 0x39d   :  { %v1442_v49 = vrot.slane %v1441_v63, 4 }
 0x39e   :  { %v1434_v50 = vadd.f32 %v1433_v40, %v1432_v62 }
 0x39f   :  { %v1443_v0 = vadd.f32 %v1442_v49, %v1441_v63 }
 0x3a0   :  { %v1435_v41 = vrot.slane %v1434_v50, 2 }
 0x3a1   :  { %v1444_v42 = vrot.slane %v1443_v0, 2 }
 0x3a2   :  { %v1436_v43 = vadd.f32 %v1435_v41, %v1434_v50 }
 0x3a3   :  { %v1445_v32 = vadd.f32 %v1444_v42, %v1443_v0 }
 0x3a4   :  { %v1437_v29 = vrot.slane %v1436_v43, 1 }
 0x3a5   :  { %v1446_v28 = vrot.slane %v1445_v32, 1 }
 0x3a6   :  { %v1438_v22 = vadd.f32 %v1437_v29, %v1436_v43 }
 0x3a7   :  { %v1447_v33 = vadd.f32 %v1446_v28, %v1445_v32 }
 0x3a8   :  { %v1448_v36 = vmul.f32 0.03125, %v1438_v22 }
 0x3a9   :  { %v1449_v37 = vmul.f32 0.03125, %v1447_v33 }
 0x3aa   :  { %v1450_v44 = vadd.f32 0.0001, %v1448_v36 }
 0x3ab   :  { %v1451_v45 = vadd.f32 0.0001, %v1449_v37  ;;  %v2543_v37 = vld [vmem:[%s3665_s5 + $0x48] sm:$0xff] }
 0x3ac   :  { %2887 = vrsqrt.f32 %v1450_v44  ;;  %v2539_v44 = vld [vmem:[%s3665_s5 + $0x28] sm:$0xff] }
 0x3ad   :  { %2889 = vrsqrt.f32 %v1451_v45  ;;  %v2540_v45 = vld [vmem:[%s3665_s5 + $0x30] sm:$0xff] }
 0x3b6   :  { %v2888_v58 = vpop.eup %2887 }
 0x3b7   :  { %v2890_v59 = vpop.eup %2889  ;;  %v1454_v60 = vmul.f32 %v2888_v58, %v1414_v17  ;;  %v1456_v2 = vmul.f32 %v2888_v58, %v1416_v18  ;;  %v1458_v3 = vmul.f32 %v2888_v58, %v1418_v19  ;;  %v1460_v4 = vmul.f32 %v2888_v58, %v1420_v20  ;;  %v2548_v58 = vld [vmem:[%s3663_s7 + $0x40] sm:$0xff] }
 0x3b8   :  { %v1455_v6 = vmul.f32 %v2890_v59, %v1415_v23  ;;  %v1457_v7 = vmul.f32 %v2890_v59, %v1417_v24  ;;  %v1459_v10 = vmul.f32 %v2890_v59, %v1419_v25  ;;  %v1461_v11 = vmul.f32 %v2890_v59, %v1421_v26  ;;  %v2549_v59 = vld [vmem:[%s3663_s7 + $0x48] sm:$0xff] }
 0x3b9   :  { %v1487_v12 = vmul.f32 %v1470_v30, %v1454_v60  ;;  %v1489_v13 = vmul.f32 %v1475_v34, %v1456_v2  ;;  %v1491_v14 = vmul.f32 %v1480_v48, %v1458_v3  ;;  %v1493_v15 = vmul.f32 %v1485_v57, %v1460_v4  ;;  %v2546_v60 = vld [vmem:[%s3662_s6 + $0x50] sm:$0xff]  ;;  %v2547_v2 = vld [vmem:[%s3662_s6 + $0x58] sm:$0xff] }
 0x3ba   :  { %v1488_v56 = vmul.f32 %v1470_v30, %v1455_v6  ;;  %v1490_v61 = vmul.f32 %v1475_v34, %v1457_v7  ;;  %v1492_v27 = vmul.f32 %v1480_v48, %v1459_v10  ;;  %v1494_v21 = vmul.f32 %v1485_v57, %v1461_v11  ;;  %v2544_v48 = vld [vmem:[%s3662_s6 + $0x40] sm:$0xff]  ;;  %v2545_v57 = vld [vmem:[%s3662_s6 + $0x48] sm:$0xff]  ;;  %v2550_v3 = vld [vmem:[%s3663_s7 + $0x50] sm:$0xff] }
 0x3bb   :  { %v1520_v38 = vadd.f32 %v1503_v46, %v1487_v12  ;;  %v1522_v39 = vadd.f32 %v1508_v47, %v1489_v13  ;;  %v1524_v17 = vadd.f32 %v1513_v16, %v1491_v14  ;;  %v1526_v18 = vadd.f32 %v1518_v55, %v1493_v15  ;;  %v2551_v4 = vld [vmem:[%s3663_s7 + $0x58] sm:$0xff]  ;;  %v2311_v6 = vld [vmem:[%s3666_s9] sm:$0xff] }
 0x3bc   :  { %v1521_v19 = vadd.f32 %v1503_v46, %v1488_v56  ;;  %v1523_v20 = vadd.f32 %v1508_v47, %v1490_v61  ;;  %v1525_v23 = vadd.f32 %v1513_v16, %v1492_v27  ;;  %v1527_v24 = vadd.f32 %v1518_v55, %v1494_v21  ;;  %v2541_v46 = vld [vmem:[%s3665_s5 + $0x38] sm:$0xff]  ;;  %v2542_v47 = vld [vmem:[%s3665_s5 + $0x40] sm:$0xff] }
 0x3bd   :  { %v1528_v25 = vmax.f32 %v1520_v38, 0.0  ;;  %v1530_v26 = vmax.f32 %v1522_v39, 0.0  ;;  %v1532_v35 = vmax.f32 %v1524_v17, 0.0  ;;  %v1534_v51 = vmax.f32 %v1526_v18, 0.0 }
 0x3be   :  { %v1529_v52 = vmax.f32 %v1521_v19, 0.0  ;;  %v1531_v53 = vmax.f32 %v1523_v20, 0.0  ;;  %v1533_v54 = vmax.f32 %v1525_v23, 0.0  ;;  %v1535_v62 = vmax.f32 %v1527_v24, 0.0 }
 0x3bf   :  { %v3391_v63 = vmul.f32 %v1528_v25, %v2974_v8  ;;  %v3394_v40 = vmul.f32 %v1530_v26, %v2974_v8  ;;  %v3397_v49 = vmul.f32 %v1532_v35, %v2974_v8  ;;  %v3400_v50 = vmul.f32 %v1534_v51, %v2974_v8 }
 0x3c0   :  { %v3403_v0 = vmul.f32 %v1529_v52, %v2976_v9  ;;  %v3406_v41 = vmul.f32 %v1531_v53, %v2976_v9  ;;  %v3409_v42 = vmul.f32 %v1533_v54, %v2976_v9  ;;  %v3412_v43 = vmul.f32 %v1535_v62, %v2976_v9 }
 0x3c1   :  { %v2758_v32 = vpack.i.bf16 %v3394_v40, %v3391_v63  ;;  %v2763_v29 = vpack.i.bf16 %v3400_v50, %v3397_v49  ;;  %v1784_v30 = vpack.c.bf16 %v3394_v40, %v3391_v63  ;;  %v1786_v36 = vpack.c.bf16 %v3400_v50, %v3397_v49 }
 0x3c2   :  { %v2768_v28 = vpack.i.bf16 %v3406_v41, %v3403_v0  ;;  %v2773_v22 = vpack.i.bf16 %v3412_v43, %v3409_v42  ;;  %v1785_v33 = vpack.c.bf16 %v3406_v41, %v3403_v0  ;;  %v1787_v34 = vpack.c.bf16 %v3412_v43, %v3409_v42  ;;  %v2873_v42 = vld [vmem:[%s3664_s4 + $0x74] ss:$0 sps:$4 sm:$0xff]  }
 0x3c3   :  { %2759 = vrot.lane.b32.xlu1 %v2758_v32, %s2898_s1 }
 0x3c4   :  { %2769 = vrot.lane.b32.xlu0 %v2768_v28, %s2898_s1 }
 0x3c7   :  { %2764 = vrot.lane.b32.xlu1 %v2763_v29, %s2898_s1 }
 0x3c8   :  { %2774 = vrot.lane.b32.xlu0 %v2773_v22, %s2898_s1 }
 0x3cb   :  { %2779 = vrot.lane.b32.xlu1 %v2758_v32, %s2899_s19 }
 0x3cc   :  { %2789 = vrot.lane.b32.xlu0 %v2768_v28, %s2899_s19 }
 0x3cf   :  { %2784 = vrot.lane.b32.xlu1 %v2763_v29, %s2899_s19 }
 0x3d0   :  { %2794 = vrot.lane.b32.xlu0 %v2773_v22, %s2899_s19 }
 0x3d3   :  { %2799 = vrot.lane.b32.xlu1 %v2758_v32, %s2900_s22 }
 0x3d4   :  { %2809 = vrot.lane.b32.xlu0 %v2768_v28, %s2900_s22 }
 0x3d7   :  { %2804 = vrot.lane.b32.xlu1 %v2763_v29, %s2900_s22 }
 0x3d8   :  { %2814 = vrot.lane.b32.xlu0 %v2773_v22, %s2900_s22 }
 0x3db   :  { %2819 = vrot.lane.b32.xlu1 %v2758_v32, %s2901_s23 }
 0x3dc   :  { %2829 = vrot.lane.b32.xlu0 %v2768_v28, %s2901_s23 }
 0x3df   :  { %2824 = vrot.lane.b32.xlu1 %v2763_v29, %s2901_s23  ;;  %v2868_v29 = vld [vmem:[%s3664_s4 + $0x78] sm:$0xff]  }
 0x3e0   :  { %2834 = vrot.lane.b32.xlu0 %v2773_v22, %s2901_s23 }
 0x3e3   :  { %2163 = vperm.xlu1 %2677, %v2543_v37  }
 0x3e4   :  { %2143 = vperm.xlu0 %2676, %v2539_v44  }
 0x3e7   :  { %2148 = vperm.xlu1 %2677, %v2540_v45  }
 0x3e8   :  { %2153 = vperm.xlu0 %2676, %v2541_v46  }
 0x3eb   :  { %2158 = vperm.xlu1 %2677, %v2542_v47  }
 0x3ec   :  { %2239 = vperm.xlu0 %2676, %v2544_v48  }
 0x3ef   :  { %2244 = vperm.xlu1 %2677, %v2545_v57  }
 0x3f0   :  { %2272 = vperm.xlu0 %2676, %v2548_v58  }
 0x3f3   :  { %2277 = vperm.xlu1 %2677, %v2549_v59  }
 0x3f4   :  { %2249 = vperm.xlu0 %2676, %v2546_v60  }
 0x3f7   :  { %2254 = vperm.xlu1 %2677, %v2547_v2  }
 0x3f8   :  { %2282 = vperm.xlu0 %2676, %v2550_v3  }
 0x3fb   :  { %2287 = vperm.xlu1 %2677, %v2551_v4  }
 0x3fc   :  { %2314 = vperm.xlu0 %2676, %v2311_v6  }
 0x435   :  { %v2760_v7 = vpop.permute.xlu1 %2759 }
 0x436   :  { %v2762_v10 = vunpack.i.h.bf16 %v2760_v7  ;;  %v2761_v11 = vunpack.i.l.bf16 %v2760_v7  ;;  %v2770_v12 = vpop.permute.xlu0 %2769 }
 0x437   :  { %v2772_v13 = vunpack.i.h.bf16 %v2770_v12  ;;  %v2771_v14 = vunpack.i.l.bf16 %v2770_v12  ;;  %v2870_v12 = vld [vmem:[%s3664_s4 + $0x88] ss:$0 sps:$4 sm:$0xff]  }
 0x439   :  { %v1599_v15 = vsel %vm72_vm3, %v2772_v13, %v2762_v10  ;;  %v1598_v16 = vsel %vm72_vm3, %v2771_v14, %v2761_v11  ;;  %v2765_v55 = vpop.permute.xlu1 %2764  ;;  %v1594_v56 = vsel %vm72_vm3, %v2761_v11, %v2771_v14  ;;  %v1595_v61 = vsel %vm72_vm3, %v2762_v10, %v2772_v13  ;;  %v2869_v11 = vld [vmem:[%s3664_s4 + $0x80] sm:$0xff]  }
 0x43a   :  { %v1608_v27 = vpack.c.bf16 %v1599_v15, %v1598_v16  ;;  %v2767_v21 = vunpack.i.h.bf16 %v2765_v55  ;;  %v2766_v38 = vunpack.i.l.bf16 %v2765_v55  ;;  %v2775_v39 = vpop.permute.xlu0 %2774  ;;  %v1609_v17 = vpack.c.bf16 %v1595_v61, %v1594_v56  ;;  %v2871_v15 = vld [vmem:[%s3664_s4 + $0x64] sm:$0xff]  }
 0x43b   :  { %v2777_v18 = vunpack.i.h.bf16 %v2775_v39  ;;  %v2776_v19 = vunpack.i.l.bf16 %v2775_v39  ;;  %v2874_v39 = vld [vmem:[%s3664_s4 + $0x8c] sm:$0xff]  }
 0x43c   :  { %1634 = vmatprep.subr.bf16.mxu0 %v1609_v17 }
 0x43d   :  { %v1601_v20 = vsel %vm72_vm3, %v2777_v18, %v2767_v21  ;;  %v1600_v23 = vsel %vm72_vm3, %v2776_v19, %v2766_v38  ;;  %v2780_v24 = vpop.permute.xlu1 %2779  ;;  %1635 = vmatpush1.bf16.msra.mxu0 %v1608_v27  ;;  %v1596_v25 = vsel %vm72_vm3, %v2766_v38, %v2776_v19  ;;  %v1597_v26 = vsel %vm72_vm3, %v2767_v21, %v2777_v18  ;;  %v2872_v27 = vld [vmem:[%s3664_s4 + $0x6c] sm:$0xff]  }
 0x43e   :  { %v1610_v35 = vpack.c.bf16 %v1601_v20, %v1600_v23  ;;  %v2782_v51 = vunpack.i.h.bf16 %v2780_v24  ;;  %v2781_v52 = vunpack.i.l.bf16 %v2780_v24  ;;  %v2790_v53 = vpop.permute.xlu0 %2789  ;;  %v1611_v54 = vpack.c.bf16 %v1597_v26, %v1596_v25 }
 0x43f   :  { %v2792_v62 = vunpack.i.h.bf16 %v2790_v53  ;;  %v2791_v32 = vunpack.i.l.bf16 %v2790_v53 }
 0x440   :  { %1636 = vmatprep.subr.bf16.mxu0 %v1611_v54 }
 0x441   :  { %v1565_v28 = vsel %vm58_vm2, %v2792_v62, %v2782_v51  ;;  %v1564_v22 = vsel %vm58_vm2, %v2791_v32, %v2781_v52  ;;  %v2785_v37 = vpop.permute.xlu1 %2784  ;;  %1637 = vmatpush1.bf16.msra.mxu0 %v1610_v35  ;;  %v1560_v44 = vsel %vm58_vm2, %v2781_v52, %v2791_v32  ;;  %v1561_v45 = vsel %vm58_vm2, %v2782_v51, %v2792_v62  ;;  %v2875_v32 = vld [vmem:[%s3664_s4 + $0x94] sm:$0xff]  }
 0x442   :  { %v1574_v46 = vpack.c.bf16 %v1565_v28, %v1564_v22  ;;  %v2787_v47 = vunpack.i.h.bf16 %v2785_v37  ;;  %v2786_v48 = vunpack.i.l.bf16 %v2785_v37  ;;  %v2795_v57 = vpop.permute.xlu0 %2794  ;;  %v1575_v58 = vpack.c.bf16 %v1561_v45, %v1560_v44 }
 0x443   :  { %v2797_v59 = vunpack.i.h.bf16 %v2795_v57  ;;  %v2796_v60 = vunpack.i.l.bf16 %v2795_v57  ;;  %v2877_v57 = vld [vmem:[%s3664_s4 + $0xa0] sm:$0xff]  }
 0x444   :  { %2497 = vmatmul.mubr.msk.bf16.vlgmr.msra.gmra.mrb[16].mxu0 %vm855_vm6, %v2868_v29  ;;  %1717 = vmatprep.subr.bf16.mxu0 %v1575_v58  ;;  %v2876_v29 = vld [vmem:[%s3664_s4 + $0x9c] ss:$0 sps:$4 sm:$0xff]  }
 0x445   :  { %v1567_v2 = vsel %vm58_vm2, %v2797_v59, %v2787_v47  ;;  %v1566_v3 = vsel %vm58_vm2, %v2796_v60, %v2786_v48  ;;  %1718 = vmatpush1.bf16.msra.mxu0 %v1574_v46  ;;  %v1562_v4 = vsel %vm58_vm2, %v2786_v48, %v2796_v60  ;;  %v1563_v6 = vsel %vm58_vm2, %v2787_v47, %v2797_v59  ;;  %v2800_v13 = vpop.permute.xlu1 %2799 }
 0x446   :  { %v1576_v7 = vpack.c.bf16 %v1567_v2, %v1566_v3  ;;  %v1577_v10 = vpack.c.bf16 %v1563_v6, %v1562_v4  ;;  %1676 = vmatprep.mubr.bf16.mxu0 %v2897_v1  ;;  %v2810_v14 = vpop.permute.xlu0 %2809  ;;  %v2802_v0 = vunpack.i.h.bf16 %v2800_v13  ;;  %v2801_v41 = vunpack.i.l.bf16 %v2800_v13 }
 0x447   :  { %v2811_v16 = vunpack.i.l.bf16 %v2810_v14 }
 0x448   :  { %1719 = vmatprep.subr.bf16.mxu0 %v1577_v10  ;;  %v2880_v10 = vld [vmem:[%s3664_s4 + $0xb4] sm:$0xff]  }
 0x449   :  { %1720 = vmatpush1.bf16.msra.mxu0 %v1576_v7  ;;  %v1901_v55 = vsel %vm374_vm4, %v2811_v16, %v2801_v41  ;;  %v2805_v63 = vpop.permute.xlu1 %2804  ;;  %v1897_v38 = vsel %vm374_vm4, %v2801_v41, %v2811_v16  ;;  %v2878_v7 = vld [vmem:[%s3664_s4 + $0xa8] sm:$0xff]  }
 0x44a   :  { %1810 = vmatprep.subr.bf16.mxu0 %v1785_v33  ;;  %v2812_v33 = vunpack.i.h.bf16 %v2810_v14  ;;  %v2815_v40 = vpop.permute.xlu0 %2814  ;;  %v2807_v43 = vunpack.i.h.bf16 %v2805_v63 }
 0x44b   :  { %v2816_v21 = vunpack.i.l.bf16 %v2815_v40 }
 0x44c   :  { %2498 = vmatmul.mubr.msk.bf16.gmra.mrb[20].mxu0 %vm855_vm6, %v2869_v11  ;;  %v1902_v56 = vsel %vm374_vm4, %v2812_v33, %v2802_v0  ;;  %v2881_v11 = vld [vmem:[%s3664_s4 + $0xbc] sm:$0xff]  }
 0x44d   :  { %1686 = vmatprep.mubr.bf16.mxu0 %v2897_v1  ;;  %v1912_v61 = vpack.c.bf16 %v1902_v56, %v1901_v55  ;;  %v2820_v49 = vpop.permute.xlu1 %2819 }
 0x44e   :  { %v2830_v50 = vpop.permute.xlu0 %2829  ;;  %v2822_v19 = vunpack.i.h.bf16 %v2820_v49  ;;  %v2821_v20 = vunpack.i.l.bf16 %v2820_v49 }
 0x44f   :  { %v2832_v23 = vunpack.i.h.bf16 %v2830_v50  ;;  %v2831_v24 = vunpack.i.l.bf16 %v2830_v50 }
 0x451   :  { %v2028_v52 = vsel %vm488_vm5, %v2831_v24, %v2821_v20  ;;  %v2029_v53 = vsel %vm488_vm5, %v2832_v23, %v2822_v19  ;;  %v2825_v28 = vpop.permute.xlu1 %2824  ;;  %v2025_v47 = vsel %vm488_vm5, %v2822_v19, %v2832_v23  ;;  %v2024_v48 = vsel %vm488_vm5, %v2821_v20, %v2831_v24 }
 0x452   :  { %v2039_v62 = vpack.c.bf16 %v2029_v53, %v2028_v52  ;;  %v2835_v22 = vpop.permute.xlu0 %2834  ;;  %v2827_v37 = vunpack.i.h.bf16 %v2825_v28  ;;  %v2826_v44 = vunpack.i.l.bf16 %v2825_v28  ;;  %v2038_v60 = vpack.c.bf16 %v2025_v47, %v2024_v48 }
 0x453   :  { %v2837_v45 = vunpack.i.h.bf16 %v2835_v22  ;;  %v2836_v46 = vunpack.i.l.bf16 %v2835_v22 }
 0x454   :  { %2499 = vmatmul.mubr.msk.bf16.gmra.mrb[24].mxu0 %vm855_vm6, %v2870_v12  ;;  %v2882_v12 = vld [vmem:[%s3664_s4 + $0xc4] ss:$0 sps:$4 sm:$0xff]  }
 0x455   :  { %1749 = vmatprep.mubr.bf16.mxu0 %v2897_v1  ;;  %v2030_v58 = vsel %vm488_vm5, %v2836_v46, %v2826_v44  ;;  %v2031_v59 = vsel %vm488_vm5, %v2837_v45, %v2827_v37  ;;  %v2027_v2 = vsel %vm488_vm5, %v2827_v37, %v2837_v45  ;;  %v2026_v3 = vsel %vm488_vm5, %v2826_v44, %v2836_v46 }
 0x456   :  { %v2041_v4 = vpack.c.bf16 %v2031_v59, %v2030_v58  ;;  %v2040_v6 = vpack.c.bf16 %v2027_v2, %v2026_v3 }
 0x45c   :  { %2503 = vmatmul.mubr.msk.bf16.vlgmr.msra.gmra.mrb[16].mxu0 %vm855_vm6, %v2871_v15 }
 0x45d   :  { %1811 = vmatpush1.bf16.msra.mxu0 %v1784_v30  ;;  %1759 = vmatprep.mubr.bf16.mxu0 %v2897_v1  ;;  %v2806_v30 = vunpack.i.l.bf16 %v2805_v63 }
 0x45e   :  { %1812 = vmatprep.subr.bf16.mxu0 %v1787_v34  ;;  %v2817_v34 = vunpack.i.h.bf16 %v2815_v40 }
 0x45f   :  { %v1903_v17 = vsel %vm374_vm4, %v2816_v21, %v2806_v30  ;;  %v1899_v35 = vsel %vm374_vm4, %v2806_v30, %v2816_v21 }
 0x460   :  { %v1904_v18 = vsel %vm374_vm4, %v2817_v34, %v2807_v43  ;;  %v1900_v26 = vsel %vm374_vm4, %v2807_v43, %v2817_v34 }
 0x461   :  { %1813 = vmatpush1.bf16.msra.mxu0 %v1786_v36  ;;  %v1898_v36 = vsel %vm374_vm4, %v2802_v0, %v2812_v33  ;;  %v1914_v51 = vpack.c.bf16 %v1904_v18, %v1903_v17  ;;  %v1913_v54 = vpack.c.bf16 %v1900_v26, %v1899_v35 }
 0x462   :  { %1937 = vmatprep.subr.bf16.mxu0 %v1912_v61  ;;  %v1911_v25 = vpack.c.bf16 %v1898_v36, %v1897_v38  ;;  %v2164_v19 = vpop.permute.xlu1 %2163 }
 0x463   :  { %v2144_v26 = vpop.permute.xlu0 %2143 }
 0x464   :  { %2504 = vmatmul.mubr.msk.bf16.gmra.mrb[20].mxu0 %vm855_vm6, %v2872_v27 }
 0x465   :  { %1769 = vmatprep.mubr.bf16.mxu0 %v2897_v1 }
 0x466   :  { %v2149_v35 = vpop.permute.xlu1 %2148 }
 0x467   :  { %v2154_v28 = vpop.permute.xlu0 %2153 }
 0x46a   :  { %v2159_v22 = vpop.permute.xlu1 %2158 }
 0x46c   :  { %2505 = vmatmul.mubr.msk.bf16.gmra.mrb[28].mxu0 %vm855_vm6, %v2873_v42 }
 0x46d   :  { %1842 = vmatprep.mubr.bf16.mxu0 %v2897_v1 }
 0x474   :  { %2514 = vmatmul.mubr.msk.bf16.vlgmr.msra.gmra.mrb[16].mxu0 %vm855_vm6, %v2874_v39 }
 0x475   :  { %1938 = vmatpush1.bf16.msra.mxu0 %v1911_v25  ;;  %1852 = vmatprep.mubr.bf16.mxu0 %v2897_v1 }
 0x476   :  { %1939 = vmatprep.subr.bf16.mxu0 %v1914_v51 }
 0x479   :  { %1940 = vmatpush1.bf16.msra.mxu0 %v1913_v54 }
 0x47a   :  { %2064 = vmatprep.subr.bf16.mxu0 %v2039_v62 }
 0x47c   :  { %2515 = vmatmul.mubr.msk.bf16.gmra.mrb[20].mxu0 %vm855_vm6, %v2875_v32 }
 0x47d   :  { %1862 = vmatprep.mubr.bf16.mxu0 %v2897_v1 }
 0x484   :  { %2516 = vmatmul.mubr.msk.bf16.gmra.mrb[32].mxu0 %vm855_vm6, %v2876_v29 }
 0x485   :  { %1969 = vmatprep.mubr.bf16.mxu0 %v2897_v1 }
 0x48c   :  { %2525 = vmatmul.mubr.msk.bf16.vlgmr.msra.gmra.mrb[16].mxu0 %vm855_vm6, %v2877_v57 }
 0x48d   :  { %2065 = vmatpush1.bf16.msra.mxu0 %v2038_v60  ;;  %1979 = vmatprep.mubr.bf16.mxu0 %v2897_v1 }
 0x48e   :  { %2066 = vmatprep.subr.bf16.mxu0 %v2041_v4 }
 0x491   :  { %2067 = vmatpush1.bf16.msra.mxu0 %v2040_v6 }
 0x494   :  { %2526 = vmatmul.mubr.msk.bf16.gmra.mrb[20].mxu0 %vm855_vm6, %v2878_v7 }
 0x495   :  { %1989 = vmatprep.mubr.bf16.mxu0 %v2897_v1 }
 0x49c   :  { %2527 = vmatmul.mubr.msk.bf16.gmra.mrb[36].mxu0 %vm855_vm6, %v2879_v31 }
 0x49d   :  { %2096 = vmatprep.mubr.bf16.mxu0 %v2897_v1 }
 0x4a4   :  { %2536 = vmatmul.mubr.msk.bf16.vlgmr.msra.gmra.mrb[16].mxu0 %vm855_vm6, %v2880_v10 }
 0x4a5   :  { %2106 = vmatprep.mubr.bf16.mxu0 %v2897_v1 }
 0x4ac   :  { %2537 = vmatmul.mubr.msk.bf16.gmra.mrb[20].mxu0 %vm855_vm6, %v2881_v11 }
 0x4ad   :  { %2116 = vmatprep.mubr.bf16.mxu0 %v2897_v1 }
 0x4b4   :  { %2538 = vmatmul.mubr.msk.bf16.gmra.mrb[40].mxu0 %vm855_vm6, %v2882_v12 }
 0x527   :  { %v1688_v13 = vpop.f32.mrb[24].mxu0 }
 0x528   :  { %v1690_v14 = vpop.f32.mrb[25].mxu0 }
 0x529   :  { %v1692_v15 = vpop.f32.mrb[26].mxu0 }
 0x52a   :  { %v1693_v0 = vpop.f32.mrb[27].mxu0 }
 0x53f   :  { %v1771_v41 = vpop.f32.mrb[28].mxu0 }
 0x540   :  { %v1772_v33 = vadd.f32 %v1771_v41, %v1688_v13  ;;  %v1773_v16 = vpop.f32.mrb[29].mxu0 }
 0x541   :  { %v1774_v55 = vadd.f32 %v1773_v16, %v1690_v14  ;;  %v1775_v56 = vpop.f32.mrb[30].mxu0 }
 0x542   :  { %v1776_v61 = vpop.f32.mrb[31].mxu0 }
 0x557   :  { %v1864_v27 = vpop.f32.mrb[32].mxu0 }
 0x558   :  { %v1879_v63 = vadd.f32 %v1864_v27, %v1772_v33  ;;  %v1866_v40 = vpop.f32.mrb[33].mxu0 }
 0x559   :  { %v1880_v1 = vadd.f32 %v1866_v40, %v1774_v55  ;;  %v1868_v42 = vpop.f32.mrb[34].mxu0 }
 0x55a   :  { %v1869_v43 = vpop.f32.mrb[35].mxu0 }
 0x56f   :  { %v1991_v30 = vpop.f32.mrb[36].mxu0 }
 0x570   :  { %v2006_v34 = vadd.f32 %v1991_v30, %v1879_v63  ;;  %v1993_v21 = vpop.f32.mrb[37].mxu0 }
 0x571   :  { %v2007_v49 = vadd.f32 %v1993_v21, %v1880_v1  ;;  %v1995_v50 = vpop.f32.mrb[38].mxu0 }
 0x572   :  { %v1996_v36 = vpop.f32.mrb[39].mxu0 }
 0x577   :  { %v2098_v38 = vpop.f32.mrb[16].mxu0 }
 0x578   :  { %v2100_v39 = vpop.f32.mrb[17].mxu0  ;;  %v2166_v37 = vadd.f32 %v2144_v26, %v2098_v38 }
 0x579   :  { %v2102_v17 = vpop.f32.mrb[18].mxu0  ;;  %v2167_v44 = vadd.f32 %v2144_v26, %v2100_v39 }
 0x57a   :  { %v2104_v18 = vpop.f32.mrb[19].mxu0  ;;  %v2168_v46 = vadd.f32 %v2149_v35, %v2102_v17 }
 0x57b   :  { %v2169_v58 = vadd.f32 %v2149_v35, %v2104_v18  ;;  %v2240_v18 = vpop.permute.xlu0 %2239 }
 0x57f   :  { %v2108_v20 = vpop.f32.mrb[20].mxu0  ;;  %v2273_v26 = vpop.permute.xlu0 %2272 }
 0x580   :  { %v2110_v23 = vpop.f32.mrb[21].mxu0  ;;  %v2170_v47 = vadd.f32 %v2154_v28, %v2108_v20 }
 0x581   :  { %v2112_v24 = vpop.f32.mrb[22].mxu0  ;;  %v2171_v59 = vadd.f32 %v2154_v28, %v2110_v23 }
 0x582   :  { %v2114_v25 = vpop.f32.mrb[23].mxu0  ;;  %v2172_v48 = vadd.f32 %v2159_v22, %v2112_v24 }
 0x583   :  { %v2173_v60 = vadd.f32 %v2159_v22, %v2114_v25 }
 0x587   :  { %v2118_v51 = vpop.f32.mrb[40].mxu0 }
 0x588   :  { %v2133_v52 = vadd.f32 %v2118_v51, %v2006_v34  ;;  %v2120_v53 = vpop.f32.mrb[41].mxu0  ;;  %v2250_v51 = vpop.permute.xlu0 %2249 }
 0x589   :  { %v2134_v54 = vadd.f32 %v2120_v53, %v2007_v49  ;;  %v2122_v62 = vpop.f32.mrb[42].mxu0 }
 0x58a   :  { %v2174_v32 = vadd.f32 %v2164_v19, %v2133_v52  ;;  %v2123_v29 = vpop.f32.mrb[43].mxu0 }
 0x58b   :  { %v2175_v45 = vadd.f32 %v2164_v19, %v2134_v54  ;;  %v2245_v19 = vpop.permute.xlu1 %2244 }
 0x58c   :  { %v2179_v57 = vrot.slane %v2174_v32, %v2968_v5 }
 0x58d   :  { %v2183_v2 = vrot.slane %v2175_v45, %v2968_v5 }
 0x58e   :  { %v2184_v3 = vsub.f32 %v2166_v37, %v2179_v57  ;;  %v2186_v4 = vsub.f32 %v2168_v46, %v2179_v57  ;;  %v2188_v6 = vsub.f32 %v2170_v47, %v2179_v57  ;;  %v2190_v7 = vsub.f32 %v2172_v48, %v2179_v57 }
 0x58f   :  { %v2189_v31 = vsub.f32 %v2171_v59, %v2183_v2  ;;  %v2191_v10 = vsub.f32 %v2173_v60, %v2183_v2  ;;  %v2185_v11 = vsub.f32 %v2167_v44, %v2183_v2  ;;  %v2187_v12 = vsub.f32 %v2169_v58, %v2183_v2  ;;  %v2278_v35 = vpop.permute.xlu1 %2277  ;;  %v2283_v58 = vpop.permute.xlu0 %2282 }
 0x590   :  { %v2192_v13 = vmul.f32 %v2184_v3, %v2184_v3  ;;  %v2194_v14 = vmul.f32 %v2186_v4, %v2186_v4  ;;  %v2196_v41 = vmul.f32 %v2188_v6, %v2188_v6  ;;  %v2198_v56 = vmul.f32 %v2190_v7, %v2190_v7 }
 0x591   :  { %v2193_v15 = vmul.f32 %v2185_v11, %v2185_v11  ;;  %v2195_v0 = vmul.f32 %v2187_v12, %v2187_v12  ;;  %v2197_v16 = vmul.f32 %v2189_v31, %v2189_v31  ;;  %v2199_v27 = vmul.f32 %v2191_v10, %v2191_v10 }
 0x592   :  { %v2200_v33 = vadd.f32 %v2194_v14, %v2192_v13 }
 0x593   :  { %v2209_v55 = vadd.f32 %v2195_v0, %v2193_v15  ;;  %v2255_v52 = vpop.permute.xlu1 %2254 }
 0x594   :  { %v2201_v61 = vadd.f32 %v2200_v33, %v2196_v41 }
 0x595   :  { %v2210_v5 = vadd.f32 %v2209_v55, %v2197_v16 }
 0x596   :  { %v2202_v63 = vadd.f32 %v2201_v61, %v2198_v56 }
 0x597   :  { %v2211_v40 = vadd.f32 %v2210_v5, %v2199_v27  ;;  %v2288_v59 = vpop.permute.xlu1 %2287 }
 0x598   :  { %v2203_v1 = vrot.slane %v2202_v63, 4 }
 0x599   :  { %v2212_v42 = vrot.slane %v2211_v40, 4 }
 0x59a   :  { %v2204_v43 = vadd.f32 %v2203_v1, %v2202_v63  ;;  %v2306_v1 = vld [vmem:[%s3667_s8] sm:$0xf] }
 0x59b   :  { %v2213_v30 = vadd.f32 %v2212_v42, %v2211_v40  ;;  %v2315_v42 = vpop.permute.xlu0 %2314 }
 0x59c   :  { %v2205_v34 = vrot.slane %v2204_v43, 2 }
 0x59d   :  { %v2214_v21 = vrot.slane %v2213_v30, 2 }
 0x59e   :  { %v2206_v49 = vadd.f32 %v2205_v34, %v2204_v43 }
 0x59f   :  { %v2215_v50 = vadd.f32 %v2214_v21, %v2213_v30 }
 0x5a0   :  { %v2207_v36 = vrot.slane %v2206_v49, 1 }
 0x5a1   :  { %v2216_v38 = vrot.slane %v2215_v50, 1 }
 0x5a2   :  { %v2208_v39 = vadd.f32 %v2207_v36, %v2206_v49 }
 0x5a3   :  { %v2217_v17 = vadd.f32 %v2216_v38, %v2215_v50  ;;  %v2895_v50 = vld [vmem:[%s3659_s0] sm:$0xff] }
 0x5a4   :  { %v2218_v20 = vmul.f32 0.03125, %v2208_v39  ;;  %v2896_v39 = vld [vmem:[%s3659_s0 + $0x8] sm:$0xff] }
 0x5a5   :  { %v2219_v23 = vmul.f32 0.03125, %v2217_v17 }
 0x5a6   :  { %v2220_v24 = vadd.f32 0.0001, %v2218_v20 }
 0x5a7   :  { %v2221_v25 = vadd.f32 0.0001, %v2219_v23 }
 0x5a8   :  { %2891 = vrsqrt.f32 %v2220_v24 }
 0x5a9   :  { %2893 = vrsqrt.f32 %v2221_v25 }
 0x5b2   :  { %v2892_v53 = vpop.eup %2891 }
 0x5b3   :  { %v2894_v54 = vpop.eup %2893  ;;  %v2224_v62 = vmul.f32 %v2892_v53, %v2184_v3  ;;  %v2226_v32 = vmul.f32 %v2892_v53, %v2186_v4  ;;  %v2228_v29 = vmul.f32 %v2892_v53, %v2188_v6  ;;  %v2230_v28 = vmul.f32 %v2892_v53, %v2190_v7 }
 0x5b4   :  { %v2225_v22 = vmul.f32 %v2894_v54, %v2185_v11  ;;  %v2227_v37 = vmul.f32 %v2894_v54, %v2187_v12  ;;  %v2229_v44 = vmul.f32 %v2894_v54, %v2189_v31  ;;  %v2231_v45 = vmul.f32 %v2894_v54, %v2191_v10 }
 0x5b5   :  { %v2257_v46 = vmul.f32 %v2240_v18, %v2224_v62  ;;  %v2259_v47 = vmul.f32 %v2245_v19, %v2226_v32  ;;  %v2261_v48 = vmul.f32 %v2250_v51, %v2228_v29  ;;  %v2263_v57 = vmul.f32 %v2255_v52, %v2230_v28 }
 0x5b6   :  { %v2258_v60 = vmul.f32 %v2240_v18, %v2225_v22  ;;  %v2260_v2 = vmul.f32 %v2245_v19, %v2227_v37  ;;  %v2262_v13 = vmul.f32 %v2250_v51, %v2229_v44  ;;  %v2264_v14 = vmul.f32 %v2255_v52, %v2231_v45 }
 0x5b7   :  { %v2290_v15 = vadd.f32 %v2273_v26, %v2257_v46  ;;  %v2292_v0 = vadd.f32 %v2278_v35, %v2259_v47  ;;  %v2294_v3 = vadd.f32 %v2283_v58, %v2261_v48  ;;  %v2296_v4 = vadd.f32 %v2288_v59, %v2263_v57 }
 0x5b8   :  { %v2291_v6 = vadd.f32 %v2273_v26, %v2258_v60  ;;  %v2293_v7 = vadd.f32 %v2278_v35, %v2260_v2  ;;  %v2295_v11 = vadd.f32 %v2283_v58, %v2262_v13  ;;  %v2297_v12 = vadd.f32 %v2288_v59, %v2264_v14 }
 0x5b9   :  { %v2298_v31 = vmax.f32 %v2290_v15, 0.0  ;;  %v2300_v10 = vmax.f32 %v2292_v0, 0.0  ;;  %v2302_v41 = vmax.f32 %v2294_v3, 0.0  ;;  %v2304_v33 = vmax.f32 %v2296_v4, 0.0 }
 0x5ba   :  { %v2299_v16 = vmax.f32 %v2291_v6, 0.0  ;;  %v2301_v55 = vmax.f32 %v2293_v7, 0.0  ;;  %v2303_v56 = vmax.f32 %v2295_v11, 0.0  ;;  %v2305_v61 = vmax.f32 %v2297_v12, 0.0 }
 0x5bb   :  { %v2307_v27 = vpack.c.bf16 %v2300_v10, %v2298_v31  ;;  %v2309_v5 = vpack.c.bf16 %v2304_v33, %v2302_v41 }
 0x5bc   :  { %v2308_v63 = vpack.c.bf16 %v2301_v55, %v2299_v16  ;;  %v2310_v40 = vpack.c.bf16 %v2305_v61, %v2303_v56 }
 0x5be   :  { %2320 = vmatprep.subr.bf16.mxu1 %v2308_v63 }
 0x5bf   :  { %2321 = vmatpush1.bf16.msra.mxu1 %v2307_v27 }
 0x5c0   :  { %2322 = vmatprep.subr.bf16.mxu1 %v2310_v40 }
 0x5c3   :  { %2323 = vmatpush1.bf16.msra.mxu1 %v2309_v5 }
 0x5c6   :  { %2552 = vmatmul.mubr.msk.bf16.vlgmr.msra.gmra.mrb[48].mxu1 %vm855_vm6, %v2306_v1 }
 0x699   :  { %v2354_v43 = vpop.f32.mrb[48].mxu1 }
 0x69a   :  { %v2355_v30 = vadd.f32 %v2354_v43, %v2315_v42  ;;  %v2356_v34 = vpop.f32.mrb[49].mxu1 }
 0x69b   :  { %v2357_v21 = vadd.f32 %v2356_v34, %v2315_v42  ;;  %v2358_v49 = vpop.f32.mrb[50].mxu1 }
 0x69c   :  { %v2361_v36 = vadd.f32 %v2895_v50, %v2355_v30  ;;  %v2359_v38 = vpop.f32.mrb[51].mxu1 }
 0x69d   :  { %v2362_v17 = vadd.f32 %v2896_v39, %v2357_v21 }
 0x69e   :  { %v2363_v18 = vmul.f32 %v2361_v36, %v2974_v8 }
 0x69f   :  { %v2364_v19 = vmul.f32 %v2362_v17, %v2976_v9 }
 0x6a0   :  { %2365 = vst [vmem:[%s3668_s10] sm:$0xff] %v2363_v18 }
 0x6a1   :  { %2366 = vst [vmem:[%s3668_s10 + $0x8] sm:$0xff] %v2364_v19 }

</bundles_post_ra>
